<compile_context>
chip_gen: v6e
topology: v6e:2x2x1
jax: 0.10.0
libtpu: 0.0.40
codegen_flags: <defaults>
</compile_context>

<pallas_src>
import functools

import jax
import jax.numpy as jnp
from jax import lax
from jax.experimental import pallas as pl
from jax.experimental.pallas import tpu as pltpu
import numpy as np


# ----------------------------------------------------------------------------
# Fused kernel factory (T, B, D are static Python ints baked into the trace).
# ----------------------------------------------------------------------------
def _make_elmo_kernel(T, B, D):

    def lstm_cell(gates, c):
        # Two full-vreg EUP passes over the whole 4D gate vector, lane-sliced
        # afterwards (instead of four quarter-lane transcendental passes).
        sig = jax.nn.sigmoid(gates)
        th = jnp.tanh(gates)
        i_g = sig[:, 0 * D:1 * D]
        f_g = sig[:, 1 * D:2 * D]
        g_g = th[:, 2 * D:3 * D]
        o_g = sig[:, 3 * D:4 * D]
        c_new = f_g * c + i_g * g_g
        h_new = o_g * jnp.tanh(c_new)
        return h_new, c_new

    def kernel(x_ref, wih1_ref, b1_ref, wrec_ref, b2_ref, wout_ref, bout_ref,
               o_ref):
        """
        x_ref:    (T*B, D)   time-major flattened embeddings (f32)
        wih1_ref: (D, 4D)    W_ih1^T
        b1_ref:   (1, 4D)    b_ih1 + b_hh1
        wrec_ref: (2D, 8D)   [[W_hh1^T, W_ih2^T], [0, W_hh2^T]]
        b2_ref:   (1, 4D)    b_ih2 + b_hh2
        wout_ref: (D, Vpad)  W_lin1^T @ W_out^T, lane-padded to 128
        bout_ref: (1, Vpad)  b_lin1 @ W_out^T + b_out, lane-padded
        o_ref:    (T*B, Vpad) logits, time-major flattened, lane-dense
        """
        f32 = jnp.float32

        # Hoisted layer-1 input projection (+ both biases) for all timesteps:
        # one large MXU matmul; the result lives in registers only.
        gx1 = (jnp.dot(x_ref[...], wih1_ref[...], preferred_element_type=f32)
               + b1_ref[...])                                    # (T*B, 4D)
        wrec = wrec_ref[...]                                     # (2D, 8D)
        b2 = b2_ref[...]                                         # (1, 4D)

        zeros_bd = jnp.zeros((B, D), f32)
        h1, c1 = zeros_bd, zeros_bd
        h2, c2 = zeros_bd, zeros_bd
        h2_slabs = []

        # Wavefront over the two stacked LSTMs.  Entering superstep s the
        # carries hold h1_{s-1}, c1_{s-1}, h2_{s-2}, c2_{s-2}.
        for s in range(T + 1):
            if s == 0:
                # h1_{-1} = 0 -> the recurrent matmul is identically zero.
                h1, c1 = lstm_cell(gx1[0:B, :], c1)
                continue
            hh = jnp.concatenate([h1, h2], axis=1)                  # (B, 2D)
            mm = jnp.dot(hh, wrec, preferred_element_type=f32)      # (B, 8D)
            if s < T:
                # layer-1 time step s
                h1, c1 = lstm_cell(gx1[s * B:(s + 1) * B, :] + mm[:, :4 * D],
                                   c1)
            # layer-2 time step s-1 (its input h1_{s-1} is already folded into
            # mm via the W_ih2^T block of wrec).
            h2, c2 = lstm_cell(mm[:, 4 * D:] + b2, c2)
            h2_slabs.append(h2)

        # Whole layer-2 hidden slab assembled in registers; one fused output
        # projection (Linear1 ∘ Linear_out collapsed, lane-dense store).
        h2_all = jnp.concatenate(h2_slabs, axis=0)                  # (T*B, D)
        out = (jnp.dot(h2_all, wout_ref[...], preferred_element_type=f32)
               + bout_ref[...])
        o_ref[...] = out.astype(o_ref.dtype)

    return kernel


# ----------------------------------------------------------------------------
# One-time weight-layout preparation (done OUTSIDE the jitted per-call path).
# ----------------------------------------------------------------------------
def prepare_elmo_params(params):
    emb = jnp.asarray(params["embedding_matrix"], jnp.float32)
    D = emb.shape[1]
    V = params["w_out"].shape[0]
    vpad = ((V + 127) // 128) * 128

    wih1_t = params["wih1"].T                                       # (D, 4D)
    b1 = (params["bih1"] + params["bhh1"]).reshape(1, 4 * D)
    b2 = (params["bih2"] + params["bhh2"]).reshape(1, 4 * D)

    # Block recurrent weight for the wavefront:
    #   [h1, h2] @ [[Whh1^T, Wih2^T], [0, Whh2^T]]
    #     = [ h1@Whh1^T , h1@Wih2^T + h2@Whh2^T ]
    top = jnp.concatenate([params["whh1"].T, params["wih2"].T], axis=1)
    bot = jnp.concatenate([jnp.zeros((D, 4 * D), jnp.float32),
                           params["whh2"].T], axis=1)
    wrec = jnp.concatenate([top, bot], axis=0)                      # (2D, 8D)

    # Linear1 and Linear_out have no nonlinearity between them -> collapse:
    #   out = h2 @ (Wlin1^T @ Wout^T) + (b_lin1 @ Wout^T + b_out)
    wout = params["w_lin1"].T @ params["w_out"].T                   # (D, V)
    bout = params["b_lin1"] @ params["w_out"].T + params["b_out"]   # (V,)
    wout = jnp.pad(wout, ((0, 0), (0, vpad - V)))                   # lane-dense
    bout = jnp.pad(bout, (0, vpad - V)).reshape(1, vpad)

    return {"emb": emb, "wih1_t": wih1_t, "b1": b1, "wrec": wrec, "b2": b2,
            "wout": wout, "bout": bout}


# ----------------------------------------------------------------------------
# Full model forward.
# ----------------------------------------------------------------------------
@functools.partial(jax.jit, static_argnames=("vocab_size",))
def custom_elmo_forward(X, prepped, *, vocab_size):
    B, T = X.shape
    emb = prepped["emb"]
    D = emb.shape[1]
    vpad = prepped["wout"].shape[1]

    # Frozen embedding lookup, time-major -> (T*B, D).  Glue outside the kernel.
    x_flat = emb[X.T].reshape(T * B, D)

    kernel = _make_elmo_kernel(T, B, D)
    vmem = pl.BlockSpec(memory_space=pltpu.MemorySpace.VMEM)
    out_flat = pl.pallas_call(
        kernel,
        out_shape=jax.ShapeDtypeStruct((T * B, vpad), jnp.float32),
        in_specs=[vmem] * 7,
        out_specs=vmem,
    )(x_flat, prepped["wih1_t"], prepped["b1"], prepped["wrec"], prepped["b2"],
      prepped["wout"], prepped["bout"])

    # (T*B, Vpad) time-major -> (B, T, V).  Tiny output; XLA glue.
    return out_flat[:, :vocab_size].reshape(T, B, vocab_size).transpose(1, 0, 2)


# ----------------------------------------------------------------------------
# Pure-JAX reference (mirrors torch semantics) for correctness checking.
# ----------------------------------------------------------------------------
def lstm_ref(x_btd, wih, whh, bih, bhh):
    B, T, D = x_btd.shape

    def step(carry, x_t):
        h, c = carry
        gates = x_t @ wih.T + bih + h @ whh.T + bhh
        i, f, g, o = jnp.split(gates, 4, axis=-1)
        i = jax.nn.sigmoid(i)
        f = jax.nn.sigmoid(f)
        g = jnp.tanh(g)
        o = jax.nn.sigmoid(o)
        c = f * c + i * g
        h = o * jnp.tanh(c)
        return (h, c), h

    init = (jnp.zeros((B, D), jnp.float32), jnp.zeros((B, D), jnp.float32))
    _, hs = lax.scan(step, init, jnp.swapaxes(x_btd, 0, 1))
    return jnp.swapaxes(hs, 0, 1)


def custom_elmo_ref(X, p):
    emb = p["embedding_matrix"][X]
    h1 = lstm_ref(emb, p["wih1"], p["whh1"], p["bih1"], p["bhh1"])
    h2 = lstm_ref(h1, p["wih2"], p["whh2"], p["bih2"], p["bhh2"])
    lin1 = h2 @ p["w_lin1"].T + p["b_lin1"]
    return lin1 @ p["w_out"].T + p["b_out"]


# ----------------------------------------------------------------------------
if __name__ == "__main__":
    vocab_size = 50
    embedding_dim = 32
    batch_size = 2
    seq_len = 8
    hidden_half = embedding_dim // 2

    key = jax.random.PRNGKey(0)
    ks = jax.random.split(key, 16)

    def rnd(k, shape, scale=0.1):
        return jax.random.normal(k, shape, dtype=jnp.float32) * scale

    params = {
        "embedding_matrix": rnd(ks[0], (vocab_size, embedding_dim), 1.0),
        # LSTM 1 (PyTorch layout: weight_ih (4D, D), weight_hh (4D, D))
        "wih1": rnd(ks[1], (4 * embedding_dim, embedding_dim)),
        "whh1": rnd(ks[2], (4 * embedding_dim, embedding_dim)),
        "bih1": rnd(ks[3], (4 * embedding_dim,)),
        "bhh1": rnd(ks[4], (4 * embedding_dim,)),
        # LSTM 2
        "wih2": rnd(ks[5], (4 * embedding_dim, embedding_dim)),
        "whh2": rnd(ks[6], (4 * embedding_dim, embedding_dim)),
        "bih2": rnd(ks[7], (4 * embedding_dim,)),
        "bhh2": rnd(ks[8], (4 * embedding_dim,)),
        # linear1: (D/2, D), linear_out: (V, D/2)
        "w_lin1": rnd(ks[9], (hidden_half, embedding_dim)),
        "b_lin1": rnd(ks[10], (hidden_half,)),
        "w_out": rnd(ks[11], (vocab_size, hidden_half)),
        "b_out": rnd(ks[12], (vocab_size,)),
    }

    X = jax.random.randint(ks[13], (batch_size, seq_len), 0, vocab_size,
                           dtype=jnp.int32)

    prepped = prepare_elmo_params(params)          # one-time layout prep
    out = custom_elmo_forward(X, prepped, vocab_size=vocab_size)
    out = jax.block_until_ready(out)

    ref = custom_elmo_ref(X, params)
    assert out.shape == (batch_size, seq_len, vocab_size), out.shape
    np.testing.assert_allclose(np.asarray(out), np.asarray(ref),
                               rtol=1e-4, atol=1e-4)

    print("KERNEL_OK")
</pallas_src>

<mosaic_0001>
module attributes {stable_mosaic.version = 11 : i64} {
  func.func @kernel(%arg0: memref<16x32xf32, #tpu.memory_space<vmem>>, %arg1: memref<32x128xf32, #tpu.memory_space<vmem>>, %arg2: memref<1x128xf32, #tpu.memory_space<vmem>>, %arg3: memref<64x256xf32, #tpu.memory_space<vmem>>, %arg4: memref<1x128xf32, #tpu.memory_space<vmem>>, %arg5: memref<32x128xf32, #tpu.memory_space<vmem>>, %arg6: memref<1x128xf32, #tpu.memory_space<vmem>>, %arg7: memref<16x128xf32, #tpu.memory_space<vmem>>) attributes {dimension_semantics = [], scalar_prefetch = 0 : i64, scratch_operands = 0 : i64, tpu.core_type = #tpu.core_type<tc>} {
    %c0 = arith.constant 0 : index
    %c0_0 = arith.constant 0 : index
    %0 = vector.load %arg0[%c0, %c0_0] : memref<16x32xf32, #tpu.memory_space<vmem>>, vector<16x32xf32>
    %c0_1 = arith.constant 0 : index
    %c0_2 = arith.constant 0 : index
    %1 = vector.load %arg1[%c0_1, %c0_2] : memref<32x128xf32, #tpu.memory_space<vmem>>, vector<32x128xf32>
    %cst = arith.constant dense<0.000000e+00> : vector<16x128xf32>
    %2 = tpu.matmul %0, %1, %cst {dimension_numbers = #tpu.dot_dimension_numbers<[1], [0], [0], [1], [0, 0, 1, 1], [], []>} : vector<16x32xf32>, vector<32x128xf32>, vector<16x128xf32> -> vector<16x128xf32>
    %c0_3 = arith.constant 0 : index
    %c0_4 = arith.constant 0 : index
    %3 = vector.load %arg2[%c0_3, %c0_4] : memref<1x128xf32, #tpu.memory_space<vmem>>, vector<1x128xf32>
    %4 = vector.broadcast %3 : vector<1x128xf32> to vector<16x128xf32>
    %5 = arith.addf %2, %4 : vector<16x128xf32>
    %c0_5 = arith.constant 0 : index
    %c0_6 = arith.constant 0 : index
    %6 = vector.load %arg3[%c0_5, %c0_6] : memref<64x256xf32, #tpu.memory_space<vmem>>, vector<64x256xf32>
    %c0_7 = arith.constant 0 : index
    %c0_8 = arith.constant 0 : index
    %7 = vector.load %arg4[%c0_7, %c0_8] : memref<1x128xf32, #tpu.memory_space<vmem>>, vector<1x128xf32>
    %cst_9 = arith.constant 0.000000e+00 : f32
    %8 = vector.broadcast %cst_9 : f32 to vector<2x32xf32>
    %9 = vector.extract_strided_slice %5 {offsets = [0, 0], sizes = [2, 128], strides = [1, 1]} : vector<16x128xf32> to vector<2x128xf32>
    %10 = arith.negf %9 : vector<2x128xf32>
    %11 = math.exp %10 : vector<2x128xf32>
    %cst_10 = arith.constant 1.000000e+00 : f32
    %12 = vector.broadcast %cst_10 : f32 to vector<2x128xf32>
    %13 = arith.addf %12, %11 : vector<2x128xf32>
    %14 = arith.divf %12, %13 : vector<2x128xf32>
    %15 = math.tanh %9 : vector<2x128xf32>
    %16 = vector.extract_strided_slice %14 {offsets = [0, 0], sizes = [2, 32], strides = [1, 1]} : vector<2x128xf32> to vector<2x32xf32>
    %17 = vector.extract_strided_slice %14 {offsets = [0, 32], sizes = [2, 32], strides = [1, 1]} : vector<2x128xf32> to vector<2x32xf32>
    %18 = vector.extract_strided_slice %15 {offsets = [0, 64], sizes = [2, 32], strides = [1, 1]} : vector<2x128xf32> to vector<2x32xf32>
    %19 = vector.extract_strided_slice %14 {offsets = [0, 96], sizes = [2, 32], strides = [1, 1]} : vector<2x128xf32> to vector<2x32xf32>
    %20 = arith.mulf %17, %8 : vector<2x32xf32>
    %21 = arith.mulf %16, %18 : vector<2x32xf32>
    %22 = arith.addf %20, %21 : vector<2x32xf32>
    %23 = math.tanh %22 : vector<2x32xf32>
    %24 = arith.mulf %19, %23 : vector<2x32xf32>
    %25 = tpu.concatenate %24, %8 in 1 : vector<2x32xf32>, vector<2x32xf32> -> vector<2x64xf32>
    %cst_11 = arith.constant dense<0.000000e+00> : vector<2x256xf32>
    %26 = tpu.matmul %25, %6, %cst_11 {dimension_numbers = #tpu.dot_dimension_numbers<[1], [0], [0], [1], [0, 0, 1, 1], [], []>} : vector<2x64xf32>, vector<64x256xf32>, vector<2x256xf32> -> vector<2x256xf32>
    %27 = vector.extract_strided_slice %5 {offsets = [2, 0], sizes = [2, 128], strides = [1, 1]} : vector<16x128xf32> to vector<2x128xf32>
    %28 = vector.extract_strided_slice %26 {offsets = [0, 0], sizes = [2, 128], strides = [1, 1]} : vector<2x256xf32> to vector<2x128xf32>
    %29 = arith.addf %27, %28 : vector<2x128xf32>
    %30 = arith.negf %29 : vector<2x128xf32>
    %31 = math.exp %30 : vector<2x128xf32>
    %cst_12 = arith.constant 1.000000e+00 : f32
    %32 = vector.broadcast %cst_12 : f32 to vector<2x128xf32>
    %33 = arith.addf %32, %31 : vector<2x128xf32>
    %34 = arith.divf %32, %33 : vector<2x128xf32>
    %35 = math.tanh %29 : vector<2x128xf32>
    %36 = vector.extract_strided_slice %34 {offsets = [0, 0], sizes = [2, 32], strides = [1, 1]} : vector<2x128xf32> to vector<2x32xf32>
    %37 = vector.extract_strided_slice %34 {offsets = [0, 32], sizes = [2, 32], strides = [1, 1]} : vector<2x128xf32> to vector<2x32xf32>
    %38 = vector.extract_strided_slice %35 {offsets = [0, 64], sizes = [2, 32], strides = [1, 1]} : vector<2x128xf32> to vector<2x32xf32>
    %39 = vector.extract_strided_slice %34 {offsets = [0, 96], sizes = [2, 32], strides = [1, 1]} : vector<2x128xf32> to vector<2x32xf32>
    %40 = arith.mulf %37, %22 : vector<2x32xf32>
    %41 = arith.mulf %36, %38 : vector<2x32xf32>
    %42 = arith.addf %40, %41 : vector<2x32xf32>
    %43 = math.tanh %42 : vector<2x32xf32>
    %44 = arith.mulf %39, %43 : vector<2x32xf32>
    %45 = vector.extract_strided_slice %26 {offsets = [0, 128], sizes = [2, 128], strides = [1, 1]} : vector<2x256xf32> to vector<2x128xf32>
    %46 = vector.broadcast %7 : vector<1x128xf32> to vector<2x128xf32>
    %47 = arith.addf %45, %46 : vector<2x128xf32>
    %48 = arith.negf %47 : vector<2x128xf32>
    %49 = math.exp %48 : vector<2x128xf32>
    %cst_13 = arith.constant 1.000000e+00 : f32
    %50 = vector.broadcast %cst_13 : f32 to vector<2x128xf32>
    %51 = arith.addf %50, %49 : vector<2x128xf32>
    %52 = arith.divf %50, %51 : vector<2x128xf32>
    %53 = math.tanh %47 : vector<2x128xf32>
    %54 = vector.extract_strided_slice %52 {offsets = [0, 0], sizes = [2, 32], strides = [1, 1]} : vector<2x128xf32> to vector<2x32xf32>
    %55 = vector.extract_strided_slice %52 {offsets = [0, 32], sizes = [2, 32], strides = [1, 1]} : vector<2x128xf32> to vector<2x32xf32>
    %56 = vector.extract_strided_slice %53 {offsets = [0, 64], sizes = [2, 32], strides = [1, 1]} : vector<2x128xf32> to vector<2x32xf32>
    %57 = vector.extract_strided_slice %52 {offsets = [0, 96], sizes = [2, 32], strides = [1, 1]} : vector<2x128xf32> to vector<2x32xf32>
    %58 = arith.mulf %55, %8 : vector<2x32xf32>
    %59 = arith.mulf %54, %56 : vector<2x32xf32>
    %60 = arith.addf %58, %59 : vector<2x32xf32>
    %61 = math.tanh %60 : vector<2x32xf32>
    %62 = arith.mulf %57, %61 : vector<2x32xf32>
    %63 = tpu.concatenate %44, %62 in 1 : vector<2x32xf32>, vector<2x32xf32> -> vector<2x64xf32>
    %cst_14 = arith.constant dense<0.000000e+00> : vector<2x256xf32>
    %64 = tpu.matmul %63, %6, %cst_14 {dimension_numbers = #tpu.dot_dimension_numbers<[1], [0], [0], [1], [0, 0, 1, 1], [], []>} : vector<2x64xf32>, vector<64x256xf32>, vector<2x256xf32> -> vector<2x256xf32>
    %65 = vector.extract_strided_slice %5 {offsets = [4, 0], sizes = [2, 128], strides = [1, 1]} : vector<16x128xf32> to vector<2x128xf32>
    %66 = vector.extract_strided_slice %64 {offsets = [0, 0], sizes = [2, 128], strides = [1, 1]} : vector<2x256xf32> to vector<2x128xf32>
    %67 = arith.addf %65, %66 : vector<2x128xf32>
    %68 = arith.negf %67 : vector<2x128xf32>
    %69 = math.exp %68 : vector<2x128xf32>
    %cst_15 = arith.constant 1.000000e+00 : f32
    %70 = vector.broadcast %cst_15 : f32 to vector<2x128xf32>
    %71 = arith.addf %70, %69 : vector<2x128xf32>
    %72 = arith.divf %70, %71 : vector<2x128xf32>
    %73 = math.tanh %67 : vector<2x128xf32>
    %74 = vector.extract_strided_slice %72 {offsets = [0, 0], sizes = [2, 32], strides = [1, 1]} : vector<2x128xf32> to vector<2x32xf32>
    %75 = vector.extract_strided_slice %72 {offsets = [0, 32], sizes = [2, 32], strides = [1, 1]} : vector<2x128xf32> to vector<2x32xf32>
    %76 = vector.extract_strided_slice %73 {offsets = [0, 64], sizes = [2, 32], strides = [1, 1]} : vector<2x128xf32> to vector<2x32xf32>
    %77 = vector.extract_strided_slice %72 {offsets = [0, 96], sizes = [2, 32], strides = [1, 1]} : vector<2x128xf32> to vector<2x32xf32>
    %78 = arith.mulf %75, %42 : vector<2x32xf32>
    %79 = arith.mulf %74, %76 : vector<2x32xf32>
    %80 = arith.addf %78, %79 : vector<2x32xf32>
    %81 = math.tanh %80 : vector<2x32xf32>
    %82 = arith.mulf %77, %81 : vector<2x32xf32>
    %83 = vector.extract_strided_slice %64 {offsets = [0, 128], sizes = [2, 128], strides = [1, 1]} : vector<2x256xf32> to vector<2x128xf32>
    %84 = vector.broadcast %7 : vector<1x128xf32> to vector<2x128xf32>
    %85 = arith.addf %83, %84 : vector<2x128xf32>
    %86 = arith.negf %85 : vector<2x128xf32>
    %87 = math.exp %86 : vector<2x128xf32>
    %cst_16 = arith.constant 1.000000e+00 : f32
    %88 = vector.broadcast %cst_16 : f32 to vector<2x128xf32>
    %89 = arith.addf %88, %87 : vector<2x128xf32>
    %90 = arith.divf %88, %89 : vector<2x128xf32>
    %91 = math.tanh %85 : vector<2x128xf32>
    %92 = vector.extract_strided_slice %90 {offsets = [0, 0], sizes = [2, 32], strides = [1, 1]} : vector<2x128xf32> to vector<2x32xf32>
    %93 = vector.extract_strided_slice %90 {offsets = [0, 32], sizes = [2, 32], strides = [1, 1]} : vector<2x128xf32> to vector<2x32xf32>
    %94 = vector.extract_strided_slice %91 {offsets = [0, 64], sizes = [2, 32], strides = [1, 1]} : vector<2x128xf32> to vector<2x32xf32>
    %95 = vector.extract_strided_slice %90 {offsets = [0, 96], sizes = [2, 32], strides = [1, 1]} : vector<2x128xf32> to vector<2x32xf32>
    %96 = arith.mulf %93, %60 : vector<2x32xf32>
    %97 = arith.mulf %92, %94 : vector<2x32xf32>
    %98 = arith.addf %96, %97 : vector<2x32xf32>
    %99 = math.tanh %98 : vector<2x32xf32>
    %100 = arith.mulf %95, %99 : vector<2x32xf32>
    %101 = tpu.concatenate %82, %100 in 1 : vector<2x32xf32>, vector<2x32xf32> -> vector<2x64xf32>
    %cst_17 = arith.constant dense<0.000000e+00> : vector<2x256xf32>
    %102 = tpu.matmul %101, %6, %cst_17 {dimension_numbers = #tpu.dot_dimension_numbers<[1], [0], [0], [1], [0, 0, 1, 1], [], []>} : vector<2x64xf32>, vector<64x256xf32>, vector<2x256xf32> -> vector<2x256xf32>
    %103 = vector.extract_strided_slice %5 {offsets = [6, 0], sizes = [2, 128], strides = [1, 1]} : vector<16x128xf32> to vector<2x128xf32>
    %104 = vector.extract_strided_slice %102 {offsets = [0, 0], sizes = [2, 128], strides = [1, 1]} : vector<2x256xf32> to vector<2x128xf32>
    %105 = arith.addf %103, %104 : vector<2x128xf32>
    %106 = arith.negf %105 : vector<2x128xf32>
    %107 = math.exp %106 : vector<2x128xf32>
    %cst_18 = arith.constant 1.000000e+00 : f32
    %108 = vector.broadcast %cst_18 : f32 to vector<2x128xf32>
    %109 = arith.addf %108, %107 : vector<2x128xf32>
    %110 = arith.divf %108, %109 : vector<2x128xf32>
    %111 = math.tanh %105 : vector<2x128xf32>
    %112 = vector.extract_strided_slice %110 {offsets = [0, 0], sizes = [2, 32], strides = [1, 1]} : vector<2x128xf32> to vector<2x32xf32>
    %113 = vector.extract_strided_slice %110 {offsets = [0, 32], sizes = [2, 32], strides = [1, 1]} : vector<2x128xf32> to vector<2x32xf32>
    %114 = vector.extract_strided_slice %111 {offsets = [0, 64], sizes = [2, 32], strides = [1, 1]} : vector<2x128xf32> to vector<2x32xf32>
    %115 = vector.extract_strided_slice %110 {offsets = [0, 96], sizes = [2, 32], strides = [1, 1]} : vector<2x128xf32> to vector<2x32xf32>
    %116 = arith.mulf %113, %80 : vector<2x32xf32>
    %117 = arith.mulf %112, %114 : vector<2x32xf32>
    %118 = arith.addf %116, %117 : vector<2x32xf32>
    %119 = math.tanh %118 : vector<2x32xf32>
    %120 = arith.mulf %115, %119 : vector<2x32xf32>
    %121 = vector.extract_strided_slice %102 {offsets = [0, 128], sizes = [2, 128], strides = [1, 1]} : vector<2x256xf32> to vector<2x128xf32>
    %122 = vector.broadcast %7 : vector<1x128xf32> to vector<2x128xf32>
    %123 = arith.addf %121, %122 : vector<2x128xf32>
    %124 = arith.negf %123 : vector<2x128xf32>
    %125 = math.exp %124 : vector<2x128xf32>
    %cst_19 = arith.constant 1.000000e+00 : f32
    %126 = vector.broadcast %cst_19 : f32 to vector<2x128xf32>
    %127 = arith.addf %126, %125 : vector<2x128xf32>
    %128 = arith.divf %126, %127 : vector<2x128xf32>
    %129 = math.tanh %123 : vector<2x128xf32>
    %130 = vector.extract_strided_slice %128 {offsets = [0, 0], sizes = [2, 32], strides = [1, 1]} : vector<2x128xf32> to vector<2x32xf32>
    %131 = vector.extract_strided_slice %128 {offsets = [0, 32], sizes = [2, 32], strides = [1, 1]} : vector<2x128xf32> to vector<2x32xf32>
    %132 = vector.extract_strided_slice %129 {offsets = [0, 64], sizes = [2, 32], strides = [1, 1]} : vector<2x128xf32> to vector<2x32xf32>
    %133 = vector.extract_strided_slice %128 {offsets = [0, 96], sizes = [2, 32], strides = [1, 1]} : vector<2x128xf32> to vector<2x32xf32>
    %134 = arith.mulf %131, %98 : vector<2x32xf32>
    %135 = arith.mulf %130, %132 : vector<2x32xf32>
    %136 = arith.addf %134, %135 : vector<2x32xf32>
    %137 = math.tanh %136 : vector<2x32xf32>
    %138 = arith.mulf %133, %137 : vector<2x32xf32>
    %139 = tpu.concatenate %120, %138 in 1 : vector<2x32xf32>, vector<2x32xf32> -> vector<2x64xf32>
    %cst_20 = arith.constant dense<0.000000e+00> : vector<2x256xf32>
    %140 = tpu.matmul %139, %6, %cst_20 {dimension_numbers = #tpu.dot_dimension_numbers<[1], [0], [0], [1], [0, 0, 1, 1], [], []>} : vector<2x64xf32>, vector<64x256xf32>, vector<2x256xf32> -> vector<2x256xf32>
    %141 = vector.extract_strided_slice %5 {offsets = [8, 0], sizes = [2, 128], strides = [1, 1]} : vector<16x128xf32> to vector<2x128xf32>
    %142 = vector.extract_strided_slice %140 {offsets = [0, 0], sizes = [2, 128], strides = [1, 1]} : vector<2x256xf32> to vector<2x128xf32>
    %143 = arith.addf %141, %142 : vector<2x128xf32>
    %144 = arith.negf %143 : vector<2x128xf32>
    %145 = math.exp %144 : vector<2x128xf32>
    %cst_21 = arith.constant 1.000000e+00 : f32
    %146 = vector.broadcast %cst_21 : f32 to vector<2x128xf32>
    %147 = arith.addf %146, %145 : vector<2x128xf32>
    %148 = arith.divf %146, %147 : vector<2x128xf32>
    %149 = math.tanh %143 : vector<2x128xf32>
    %150 = vector.extract_strided_slice %148 {offsets = [0, 0], sizes = [2, 32], strides = [1, 1]} : vector<2x128xf32> to vector<2x32xf32>
    %151 = vector.extract_strided_slice %148 {offsets = [0, 32], sizes = [2, 32], strides = [1, 1]} : vector<2x128xf32> to vector<2x32xf32>
    %152 = vector.extract_strided_slice %149 {offsets = [0, 64], sizes = [2, 32], strides = [1, 1]} : vector<2x128xf32> to vector<2x32xf32>
    %153 = vector.extract_strided_slice %148 {offsets = [0, 96], sizes = [2, 32], strides = [1, 1]} : vector<2x128xf32> to vector<2x32xf32>
    %154 = arith.mulf %151, %118 : vector<2x32xf32>
    %155 = arith.mulf %150, %152 : vector<2x32xf32>
    %156 = arith.addf %154, %155 : vector<2x32xf32>
    %157 = math.tanh %156 : vector<2x32xf32>
    %158 = arith.mulf %153, %157 : vector<2x32xf32>
    %159 = vector.extract_strided_slice %140 {offsets = [0, 128], sizes = [2, 128], strides = [1, 1]} : vector<2x256xf32> to vector<2x128xf32>
    %160 = vector.broadcast %7 : vector<1x128xf32> to vector<2x128xf32>
    %161 = arith.addf %159, %160 : vector<2x128xf32>
    %162 = arith.negf %161 : vector<2x128xf32>
    %163 = math.exp %162 : vector<2x128xf32>
    %cst_22 = arith.constant 1.000000e+00 : f32
    %164 = vector.broadcast %cst_22 : f32 to vector<2x128xf32>
    %165 = arith.addf %164, %163 : vector<2x128xf32>
    %166 = arith.divf %164, %165 : vector<2x128xf32>
    %167 = math.tanh %161 : vector<2x128xf32>
    %168 = vector.extract_strided_slice %166 {offsets = [0, 0], sizes = [2, 32], strides = [1, 1]} : vector<2x128xf32> to vector<2x32xf32>
    %169 = vector.extract_strided_slice %166 {offsets = [0, 32], sizes = [2, 32], strides = [1, 1]} : vector<2x128xf32> to vector<2x32xf32>
    %170 = vector.extract_strided_slice %167 {offsets = [0, 64], sizes = [2, 32], strides = [1, 1]} : vector<2x128xf32> to vector<2x32xf32>
    %171 = vector.extract_strided_slice %166 {offsets = [0, 96], sizes = [2, 32], strides = [1, 1]} : vector<2x128xf32> to vector<2x32xf32>
    %172 = arith.mulf %169, %136 : vector<2x32xf32>
    %173 = arith.mulf %168, %170 : vector<2x32xf32>
    %174 = arith.addf %172, %173 : vector<2x32xf32>
    %175 = math.tanh %174 : vector<2x32xf32>
    %176 = arith.mulf %171, %175 : vector<2x32xf32>
    %177 = tpu.concatenate %158, %176 in 1 : vector<2x32xf32>, vector<2x32xf32> -> vector<2x64xf32>
    %cst_23 = arith.constant dense<0.000000e+00> : vector<2x256xf32>
    %178 = tpu.matmul %177, %6, %cst_23 {dimension_numbers = #tpu.dot_dimension_numbers<[1], [0], [0], [1], [0, 0, 1, 1], [], []>} : vector<2x64xf32>, vector<64x256xf32>, vector<2x256xf32> -> vector<2x256xf32>
    %179 = vector.extract_strided_slice %5 {offsets = [10, 0], sizes = [2, 128], strides = [1, 1]} : vector<16x128xf32> to vector<2x128xf32>
    %180 = vector.extract_strided_slice %178 {offsets = [0, 0], sizes = [2, 128], strides = [1, 1]} : vector<2x256xf32> to vector<2x128xf32>
    %181 = arith.addf %179, %180 : vector<2x128xf32>
    %182 = arith.negf %181 : vector<2x128xf32>
    %183 = math.exp %182 : vector<2x128xf32>
    %cst_24 = arith.constant 1.000000e+00 : f32
    %184 = vector.broadcast %cst_24 : f32 to vector<2x128xf32>
    %185 = arith.addf %184, %183 : vector<2x128xf32>
    %186 = arith.divf %184, %185 : vector<2x128xf32>
    %187 = math.tanh %181 : vector<2x128xf32>
    %188 = vector.extract_strided_slice %186 {offsets = [0, 0], sizes = [2, 32], strides = [1, 1]} : vector<2x128xf32> to vector<2x32xf32>
    %189 = vector.extract_strided_slice %186 {offsets = [0, 32], sizes = [2, 32], strides = [1, 1]} : vector<2x128xf32> to vector<2x32xf32>
    %190 = vector.extract_strided_slice %187 {offsets = [0, 64], sizes = [2, 32], strides = [1, 1]} : vector<2x128xf32> to vector<2x32xf32>
    %191 = vector.extract_strided_slice %186 {offsets = [0, 96], sizes = [2, 32], strides = [1, 1]} : vector<2x128xf32> to vector<2x32xf32>
    %192 = arith.mulf %189, %156 : vector<2x32xf32>
    %193 = arith.mulf %188, %190 : vector<2x32xf32>
    %194 = arith.addf %192, %193 : vector<2x32xf32>
    %195 = math.tanh %194 : vector<2x32xf32>
    %196 = arith.mulf %191, %195 : vector<2x32xf32>
    %197 = vector.extract_strided_slice %178 {offsets = [0, 128], sizes = [2, 128], strides = [1, 1]} : vector<2x256xf32> to vector<2x128xf32>
    %198 = vector.broadcast %7 : vector<1x128xf32> to vector<2x128xf32>
    %199 = arith.addf %197, %198 : vector<2x128xf32>
    %200 = arith.negf %199 : vector<2x128xf32>
    %201 = math.exp %200 : vector<2x128xf32>
    %cst_25 = arith.constant 1.000000e+00 : f32
    %202 = vector.broadcast %cst_25 : f32 to vector<2x128xf32>
    %203 = arith.addf %202, %201 : vector<2x128xf32>
    %204 = arith.divf %202, %203 : vector<2x128xf32>
    %205 = math.tanh %199 : vector<2x128xf32>
    %206 = vector.extract_strided_slice %204 {offsets = [0, 0], sizes = [2, 32], strides = [1, 1]} : vector<2x128xf32> to vector<2x32xf32>
    %207 = vector.extract_strided_slice %204 {offsets = [0, 32], sizes = [2, 32], strides = [1, 1]} : vector<2x128xf32> to vector<2x32xf32>
    %208 = vector.extract_strided_slice %205 {offsets = [0, 64], sizes = [2, 32], strides = [1, 1]} : vector<2x128xf32> to vector<2x32xf32>
    %209 = vector.extract_strided_slice %204 {offsets = [0, 96], sizes = [2, 32], strides = [1, 1]} : vector<2x128xf32> to vector<2x32xf32>
    %210 = arith.mulf %207, %174 : vector<2x32xf32>
    %211 = arith.mulf %206, %208 : vector<2x32xf32>
    %212 = arith.addf %210, %211 : vector<2x32xf32>
    %213 = math.tanh %212 : vector<2x32xf32>
    %214 = arith.mulf %209, %213 : vector<2x32xf32>
    %215 = tpu.concatenate %196, %214 in 1 : vector<2x32xf32>, vector<2x32xf32> -> vector<2x64xf32>
    %cst_26 = arith.constant dense<0.000000e+00> : vector<2x256xf32>
    %216 = tpu.matmul %215, %6, %cst_26 {dimension_numbers = #tpu.dot_dimension_numbers<[1], [0], [0], [1], [0, 0, 1, 1], [], []>} : vector<2x64xf32>, vector<64x256xf32>, vector<2x256xf32> -> vector<2x256xf32>
    %217 = vector.extract_strided_slice %5 {offsets = [12, 0], sizes = [2, 128], strides = [1, 1]} : vector<16x128xf32> to vector<2x128xf32>
    %218 = vector.extract_strided_slice %216 {offsets = [0, 0], sizes = [2, 128], strides = [1, 1]} : vector<2x256xf32> to vector<2x128xf32>
    %219 = arith.addf %217, %218 : vector<2x128xf32>
    %220 = arith.negf %219 : vector<2x128xf32>
    %221 = math.exp %220 : vector<2x128xf32>
    %cst_27 = arith.constant 1.000000e+00 : f32
    %222 = vector.broadcast %cst_27 : f32 to vector<2x128xf32>
    %223 = arith.addf %222, %221 : vector<2x128xf32>
    %224 = arith.divf %222, %223 : vector<2x128xf32>
    %225 = math.tanh %219 : vector<2x128xf32>
    %226 = vector.extract_strided_slice %224 {offsets = [0, 0], sizes = [2, 32], strides = [1, 1]} : vector<2x128xf32> to vector<2x32xf32>
    %227 = vector.extract_strided_slice %224 {offsets = [0, 32], sizes = [2, 32], strides = [1, 1]} : vector<2x128xf32> to vector<2x32xf32>
    %228 = vector.extract_strided_slice %225 {offsets = [0, 64], sizes = [2, 32], strides = [1, 1]} : vector<2x128xf32> to vector<2x32xf32>
    %229 = vector.extract_strided_slice %224 {offsets = [0, 96], sizes = [2, 32], strides = [1, 1]} : vector<2x128xf32> to vector<2x32xf32>
    %230 = arith.mulf %227, %194 : vector<2x32xf32>
    %231 = arith.mulf %226, %228 : vector<2x32xf32>
    %232 = arith.addf %230, %231 : vector<2x32xf32>
    %233 = math.tanh %232 : vector<2x32xf32>
    %234 = arith.mulf %229, %233 : vector<2x32xf32>
    %235 = vector.extract_strided_slice %216 {offsets = [0, 128], sizes = [2, 128], strides = [1, 1]} : vector<2x256xf32> to vector<2x128xf32>
    %236 = vector.broadcast %7 : vector<1x128xf32> to vector<2x128xf32>
    %237 = arith.addf %235, %236 : vector<2x128xf32>
    %238 = arith.negf %237 : vector<2x128xf32>
    %239 = math.exp %238 : vector<2x128xf32>
    %cst_28 = arith.constant 1.000000e+00 : f32
    %240 = vector.broadcast %cst_28 : f32 to vector<2x128xf32>
    %241 = arith.addf %240, %239 : vector<2x128xf32>
    %242 = arith.divf %240, %241 : vector<2x128xf32>
    %243 = math.tanh %237 : vector<2x128xf32>
    %244 = vector.extract_strided_slice %242 {offsets = [0, 0], sizes = [2, 32], strides = [1, 1]} : vector<2x128xf32> to vector<2x32xf32>
    %245 = vector.extract_strided_slice %242 {offsets = [0, 32], sizes = [2, 32], strides = [1, 1]} : vector<2x128xf32> to vector<2x32xf32>
    %246 = vector.extract_strided_slice %243 {offsets = [0, 64], sizes = [2, 32], strides = [1, 1]} : vector<2x128xf32> to vector<2x32xf32>
    %247 = vector.extract_strided_slice %242 {offsets = [0, 96], sizes = [2, 32], strides = [1, 1]} : vector<2x128xf32> to vector<2x32xf32>
    %248 = arith.mulf %245, %212 : vector<2x32xf32>
    %249 = arith.mulf %244, %246 : vector<2x32xf32>
    %250 = arith.addf %248, %249 : vector<2x32xf32>
    %251 = math.tanh %250 : vector<2x32xf32>
    %252 = arith.mulf %247, %251 : vector<2x32xf32>
    %253 = tpu.concatenate %234, %252 in 1 : vector<2x32xf32>, vector<2x32xf32> -> vector<2x64xf32>
    %cst_29 = arith.constant dense<0.000000e+00> : vector<2x256xf32>
    %254 = tpu.matmul %253, %6, %cst_29 {dimension_numbers = #tpu.dot_dimension_numbers<[1], [0], [0], [1], [0, 0, 1, 1], [], []>} : vector<2x64xf32>, vector<64x256xf32>, vector<2x256xf32> -> vector<2x256xf32>
    %255 = vector.extract_strided_slice %5 {offsets = [14, 0], sizes = [2, 128], strides = [1, 1]} : vector<16x128xf32> to vector<2x128xf32>
    %256 = vector.extract_strided_slice %254 {offsets = [0, 0], sizes = [2, 128], strides = [1, 1]} : vector<2x256xf32> to vector<2x128xf32>
    %257 = arith.addf %255, %256 : vector<2x128xf32>
    %258 = arith.negf %257 : vector<2x128xf32>
    %259 = math.exp %258 : vector<2x128xf32>
    %cst_30 = arith.constant 1.000000e+00 : f32
    %260 = vector.broadcast %cst_30 : f32 to vector<2x128xf32>
    %261 = arith.addf %260, %259 : vector<2x128xf32>
    %262 = arith.divf %260, %261 : vector<2x128xf32>
    %263 = math.tanh %257 : vector<2x128xf32>
    %264 = vector.extract_strided_slice %262 {offsets = [0, 0], sizes = [2, 32], strides = [1, 1]} : vector<2x128xf32> to vector<2x32xf32>
    %265 = vector.extract_strided_slice %262 {offsets = [0, 32], sizes = [2, 32], strides = [1, 1]} : vector<2x128xf32> to vector<2x32xf32>
    %266 = vector.extract_strided_slice %263 {offsets = [0, 64], sizes = [2, 32], strides = [1, 1]} : vector<2x128xf32> to vector<2x32xf32>
    %267 = vector.extract_strided_slice %262 {offsets = [0, 96], sizes = [2, 32], strides = [1, 1]} : vector<2x128xf32> to vector<2x32xf32>
    %268 = arith.mulf %265, %232 : vector<2x32xf32>
    %269 = arith.mulf %264, %266 : vector<2x32xf32>
    %270 = arith.addf %268, %269 : vector<2x32xf32>
    %271 = math.tanh %270 : vector<2x32xf32>
    %272 = arith.mulf %267, %271 : vector<2x32xf32>
    %273 = vector.extract_strided_slice %254 {offsets = [0, 128], sizes = [2, 128], strides = [1, 1]} : vector<2x256xf32> to vector<2x128xf32>
    %274 = vector.broadcast %7 : vector<1x128xf32> to vector<2x128xf32>
    %275 = arith.addf %273, %274 : vector<2x128xf32>
    %276 = arith.negf %275 : vector<2x128xf32>
    %277 = math.exp %276 : vector<2x128xf32>
    %cst_31 = arith.constant 1.000000e+00 : f32
    %278 = vector.broadcast %cst_31 : f32 to vector<2x128xf32>
    %279 = arith.addf %278, %277 : vector<2x128xf32>
    %280 = arith.divf %278, %279 : vector<2x128xf32>
    %281 = math.tanh %275 : vector<2x128xf32>
    %282 = vector.extract_strided_slice %280 {offsets = [0, 0], sizes = [2, 32], strides = [1, 1]} : vector<2x128xf32> to vector<2x32xf32>
    %283 = vector.extract_strided_slice %280 {offsets = [0, 32], sizes = [2, 32], strides = [1, 1]} : vector<2x128xf32> to vector<2x32xf32>
    %284 = vector.extract_strided_slice %281 {offsets = [0, 64], sizes = [2, 32], strides = [1, 1]} : vector<2x128xf32> to vector<2x32xf32>
    %285 = vector.extract_strided_slice %280 {offsets = [0, 96], sizes = [2, 32], strides = [1, 1]} : vector<2x128xf32> to vector<2x32xf32>
    %286 = arith.mulf %283, %250 : vector<2x32xf32>
    %287 = arith.mulf %282, %284 : vector<2x32xf32>
    %288 = arith.addf %286, %287 : vector<2x32xf32>
    %289 = math.tanh %288 : vector<2x32xf32>
    %290 = arith.mulf %285, %289 : vector<2x32xf32>
    %291 = tpu.concatenate %272, %290 in 1 : vector<2x32xf32>, vector<2x32xf32> -> vector<2x64xf32>
    %cst_32 = arith.constant dense<0.000000e+00> : vector<2x256xf32>
    %292 = tpu.matmul %291, %6, %cst_32 {dimension_numbers = #tpu.dot_dimension_numbers<[1], [0], [0], [1], [0, 0, 1, 1], [], []>} : vector<2x64xf32>, vector<64x256xf32>, vector<2x256xf32> -> vector<2x256xf32>
    %293 = vector.extract_strided_slice %292 {offsets = [0, 128], sizes = [2, 128], strides = [1, 1]} : vector<2x256xf32> to vector<2x128xf32>
    %294 = vector.broadcast %7 : vector<1x128xf32> to vector<2x128xf32>
    %295 = arith.addf %293, %294 : vector<2x128xf32>
    %296 = arith.negf %295 : vector<2x128xf32>
    %297 = math.exp %296 : vector<2x128xf32>
    %cst_33 = arith.constant 1.000000e+00 : f32
    %298 = vector.broadcast %cst_33 : f32 to vector<2x128xf32>
    %299 = arith.addf %298, %297 : vector<2x128xf32>
    %300 = arith.divf %298, %299 : vector<2x128xf32>
    %301 = math.tanh %295 : vector<2x128xf32>
    %302 = vector.extract_strided_slice %300 {offsets = [0, 0], sizes = [2, 32], strides = [1, 1]} : vector<2x128xf32> to vector<2x32xf32>
    %303 = vector.extract_strided_slice %300 {offsets = [0, 32], sizes = [2, 32], strides = [1, 1]} : vector<2x128xf32> to vector<2x32xf32>
    %304 = vector.extract_strided_slice %301 {offsets = [0, 64], sizes = [2, 32], strides = [1, 1]} : vector<2x128xf32> to vector<2x32xf32>
    %305 = vector.extract_strided_slice %300 {offsets = [0, 96], sizes = [2, 32], strides = [1, 1]} : vector<2x128xf32> to vector<2x32xf32>
    %306 = arith.mulf %303, %288 : vector<2x32xf32>
    %307 = arith.mulf %302, %304 : vector<2x32xf32>
    %308 = arith.addf %306, %307 : vector<2x32xf32>
    %309 = math.tanh %308 : vector<2x32xf32>
    %310 = arith.mulf %305, %309 : vector<2x32xf32>
    %311 = tpu.concatenate %62, %100, %138, %176, %214, %252, %290, %310 in 0 : vector<2x32xf32>, vector<2x32xf32>, vector<2x32xf32>, vector<2x32xf32>, vector<2x32xf32>, vector<2x32xf32>, vector<2x32xf32>, vector<2x32xf32> -> vector<16x32xf32>
    %c0_34 = arith.constant 0 : index
    %c0_35 = arith.constant 0 : index
    %312 = vector.load %arg5[%c0_34, %c0_35] : memref<32x128xf32, #tpu.memory_space<vmem>>, vector<32x128xf32>
    %cst_36 = arith.constant dense<0.000000e+00> : vector<16x128xf32>
    %313 = tpu.matmul %311, %312, %cst_36 {dimension_numbers = #tpu.dot_dimension_numbers<[1], [0], [0], [1], [0, 0, 1, 1], [], []>} : vector<16x32xf32>, vector<32x128xf32>, vector<16x128xf32> -> vector<16x128xf32>
    %c0_37 = arith.constant 0 : index
    %c0_38 = arith.constant 0 : index
    %314 = vector.load %arg6[%c0_37, %c0_38] : memref<1x128xf32, #tpu.memory_space<vmem>>, vector<1x128xf32>
    %315 = vector.broadcast %314 : vector<1x128xf32> to vector<16x128xf32>
    %316 = arith.addf %313, %315 : vector<16x128xf32>
    %c0_39 = arith.constant 0 : index
    %c0_40 = arith.constant 0 : index
    %317 = vector.load %arg7[%c0_39, %c0_40] : memref<16x128xf32, #tpu.memory_space<vmem>>, vector<16x128xf32>
    tpu.vector_store %arg7[%c0_39, %c0_40], %316 {strides = array<i32>} : memref<16x128xf32, #tpu.memory_space<vmem>>, vector<16x128xf32>,
    return
  }
}

</mosaic_0001>

<bundles_post_ra>
// kernel: custom_elmo_forward.1
= control target key start
LH: loop header
LB: loop body
LE: loop exit
PB: predicated region body
PF: predicated region fallthrough
CT: control target
= control target key end

     0   :  { %vm39_vm0 = vcmask 261120   ;;  %v1576_v38 = vmov 0.0   ;;  %vm167_vm1 = vcmask 523264   ;;  %vm1267_vm2 = vcmask 1041408   ;;  %s2059_s1 = inlined_call_operand.vmem [shape: f32[32,128], index: 1, kind: input, shape index: {}]   ;;  %s2060_s0 = inlined_call_operand.vmem [shape: f32[16,32], index: 0, kind: input, shape index: {}]   ;;  %s2061_s2 = inlined_call_operand.vmem [shape: f32[1,128], index: 2, kind: input, shape index: {}]   ;;  %s2062_s3 = inlined_call_operand.vmem [shape: f32[64,256], index: 3, kind: input, shape index: {}]   ;;  %s2063_s4 = inlined_call_operand.vmem [shape: f32[1,128], index: 4, kind: input, shape index: {}]   ;;  %s2064_s5 = inlined_call_operand.vmem [shape: f32[32,128], index: 5, kind: input, shape index: {}]   ;;  %s2065_s6 = inlined_call_operand.vmem [shape: f32[1,128], index: 6, kind: input, shape index: {}]   ;;  %s2066_s7 = inlined_call_operand.vmem [shape: f32[16,128], index: 7, kind: output, shape index: {}]  }
   0x1   :  { %v31_v0 = vld [vmem:[%s2059_s1 + $0x18] sm:$0xff]  ;;  %v30_v1 = vld [vmem:[%s2059_s1 + $0x10] sm:$0xff]  ;;  %v26_v2 = vld [vmem:[%s2060_s0] sm:$0xff]  ;;  %235 = vmatprep.mubr.f32.mxu1 %v1576_v38  ;;  %vm1269_vm3 = vcmask 1043456   ;;  %vm1271_vm4 = vcmask 1045504  }
   0x2   :  { %1421 = vmatprep.subr.mxu0 %v31_v0  ;;  %v29_v3 = vld [vmem:[%s2059_s1 + $0x8] sm:$0xff]  ;;  %1429 = vmatprep.mubr.msk.f32.mxu0 %vm39_vm0, %v26_v2  ;;  %v28_v4 = vld [vmem:[%s2059_s1] sm:$0xff]  ;;  %s1574_s1 = smov 64   ;;  %v1658_v21 = vld [vmem:[%s2062_s3 + $0x78] sm:$0xff] }
   0x3   :  { %1422 = vmatpush3.msra.mxu0 %v31_v0  ;;  %v27_v5 = vld [vmem:[%s2060_s0 + $0x8] sm:$0xff]  ;;  %v1378_v6 = vld [vmem:[%s2061_s2] ss:$0 sm:$0xff]  ;;  %s1575_s0 = smov 32   ;;  %v1663_v22 = vld [vmem:[%s2062_s3 + $0x70] sm:$0xff]  ;;  %187 = vmatprep.subr.mxu1 %v1658_v21 }
   0x4   :  { %1423 = vmatprep.subr.mxu0 %v30_v1  ;;  %v1668_v23 = vld [vmem:[%s2062_s3 + $0x68] sm:$0xff]  ;;  %v1674_v24 = vld [vmem:[%s2062_s3 + $0x60] sm:$0xff]  ;;  %188 = vmatpush1.msra.mxu1 %v1663_v22  ;;  %v1681_v25 = vld [vmem:[%s2062_s3 + $0x58] sm:$0xff] }
   0x5   :  { %1424 = vmatpush3.msra.mxu0 %v30_v1  ;;  %189 = vmatprep.subr.mxu1 %v1668_v23  ;;  %v1688_v26 = vld [vmem:[%s2062_s3 + $0x50] sm:$0xff]  ;;  %v1695_v27 = vld [vmem:[%s2062_s3 + $0x48] sm:$0xff]  ;;  %v1702_v28 = vld [vmem:[%s2062_s3 + $0x40] sm:$0xff] }
   0x6   :  { %1425 = vmatprep.subr.mxu0 %v29_v3  ;;  %190 = vmatpush1.msra.mxu1 %v1674_v24  ;;  %v1709_v29 = vld [vmem:[%s2062_s3 + $0x38] sm:$0xff]  ;;  %v1716_v30 = vld [vmem:[%s2062_s3 + $0x30] sm:$0xff]  ;;  %v1723_v31 = vld [vmem:[%s2062_s3 + $0x28] sm:$0xff] }
   0x7   :  { %1426 = vmatpush3.msra.mxu0 %v29_v3  ;;  %191 = vmatprep.subr.mxu1 %v1681_v25  ;;  %v1730_v33 = vld [vmem:[%s2062_s3 + $0x20] sm:$0xff]  ;;  %v1738_v34 = vld [vmem:[%s2062_s3 + $0x18] sm:$0xff]  ;;  %v1744_v35 = vld [vmem:[%s2062_s3 + $0x10] sm:$0xff] }
   0x8   :  { %1427 = vmatprep.subr.mxu0 %v28_v4  ;;  %192 = vmatpush1.msra.mxu1 %v1688_v26  ;;  %v1751_v36 = vld [vmem:[%s2062_s3 + $0x8] sm:$0xff]  ;;  %v1764_v37 = vld [vmem:[%s2062_s3] sm:$0xff] }
   0x9   :  { %1428 = vmatpush3.msra.mxu0 %v28_v4  ;;  %193 = vmatprep.subr.mxu1 %v1695_v27  ;;  %v1796_v44 = vld [vmem:[%s2063_s4] ss:$0 sm:$0xff] }
   0xa   :  { %1430 = vmatmul.mubr.msk.f32.vlgmr.msra.gmra.mxu0 %vm39_vm0, %v27_v5  ;;  %334 = vmatprep.subr.mxu0 %v1658_v21 }
   0xb   :  { %335 = vmatpush1.msra.mxu0 %v1663_v22  ;;  %194 = vmatpush1.msra.mxu1 %v1702_v28 }
   0xc   :  { %336 = vmatprep.subr.mxu0 %v1668_v23  ;;  %195 = vmatprep.subr.mxu1 %v1709_v29 }
   0xd   :  { %337 = vmatpush1.msra.mxu0 %v1674_v24  ;;  %196 = vmatpush1.msra.mxu1 %v1716_v30 }
   0xe   :  { %338 = vmatprep.subr.mxu0 %v1681_v25  ;;  %197 = vmatprep.subr.mxu1 %v1723_v31 }
   0xf   :  { %339 = vmatpush1.msra.mxu0 %v1688_v26  ;;  %198 = vmatpush1.msra.mxu1 %v1730_v33 }
  0x10   :  { %340 = vmatprep.subr.mxu0 %v1695_v27  ;;  %199 = vmatprep.subr.mxu1 %v1738_v34 }
  0x11   :  { %341 = vmatpush1.msra.mxu0 %v1702_v28  ;;  %200 = vmatpush1.msra.mxu1 %v1744_v35 }
  0x12   :  { %342 = vmatprep.subr.mxu0 %v1709_v29  ;;  %201 = vmatprep.subr.mxu1 %v1751_v36 }
  0x13   :  { %343 = vmatpush1.msra.mxu0 %v1716_v30  ;;  %202 = vmatpush1.msra.mxu1 %v1764_v37 }
  0x14   :  { %344 = vmatprep.subr.mxu0 %v1723_v31  ;;  %382 = vmatprep.mubr.f32.mxu0 %v1576_v38 }
  0x15   :  { %345 = vmatpush1.msra.mxu0 %v1730_v33  ;;  %475 = vmatprep.subr.mxu1 %v1658_v21 }
  0x16   :  { %346 = vmatprep.subr.mxu0 %v1738_v34 }
  0x17   :  { %347 = vmatpush1.msra.mxu0 %v1744_v35 }
  0x18   :  { %348 = vmatprep.subr.mxu0 %v1751_v36 }
  0x19   :  { %349 = vmatpush1.msra.mxu0 %v1764_v37 }
  0x1a   :  { %616 = vmatprep.subr.mxu0 %v1658_v21 }
  0xca   :  { %v1431_v7 = vpop.f32.mrf.mxu0 }
  0xcb   :  { %v1640_v8 = vadd.f32 %v1431_v7, %v1378_v6 }
  0xcc   :  { %v112_v9 = vpop.f32.mrf.mxu0 }
  0xcd   :  { %v1642_v10 = vadd.f32 %v1378_v6, %v112_v9 }
  0xcf   :  { %1446 = vtanh.f32 %v1642_v10  ;;  %v1381_v12 = vmul.f32 -1.442695, %v1642_v10 }
  0xd1   :  { %1448 = vpow2.f32 %v1381_v12 }
  0xdc   :  { %v1447_v11 = vpop.eup %1446 }
  0xdd   :  { %147 = vrot.lane.b32.xlu0 %v1447_v11, %s1574_s1 }
  0xde   :  { %v1449_v13 = vpop.eup %1448 }
  0xdf   :  { %v141_v14 = vadd.f32 1.0, %v1449_v13 }
  0xe1   :  { %1450 = vrcp.f32 %v141_v14 }
  0xee   :  { %v1647_v15 = vpop.eup %1450 }
  0xef   :  { %v145_v18 = vmul.f32 0.0, %v1647_v15 }
 0x14f   :  { %v148_v16 = vpop.permute.xlu0 %147 }
 0x150   :  { %v150_v17 = vmul.f32 %v1647_v15, %v148_v16 }
 0x152   :  { %152 = vrot.lane.b32.xlu0 %v150_v17, %s1575_s0 }
 0x1c4   :  { %v153_v19 = vpop.permute.xlu0 %152 }
 0x1c5   :  { %v1652_v20 = vadd.f32 %v153_v19, %v145_v18 }
 0x1c7   :  { %1452 = vtanh.f32 %v1652_v20  ;;  %v254_v63 = vrot.slane %v1652_v20, 6 }
 0x1d4   :  { %v1453_v32 = vpop.eup %1452 }
 0x1d5   :  { %158 = vrot.lane.b32.xlu1 %v1453_v32, %s1574_s1 }
 0x247   :  { %v159_v39 = vpop.permute.xlu1 %158 }
 0x248   :  { %v161_v40 = vmul.f32 %v1647_v15, %v159_v39 }
 0x24a   :  { %163 = vrot.lane.b32.xlu1 %v161_v40, %s1575_s0 }
 0x2bc   :  { %v164_v41 = vpop.permute.xlu1 %163 }
 0x2bd   :  { %v166_v42 = vsel %vm39_vm0, %v164_v41, 0.0 }
 0x2be   :  { %1382 = vmatmul.mubr.msk.f32.vlgmr.msra.gmra.mxu1 %vm167_vm1, %v166_v42 }
 0x2bf   :  { %476 = vmatpush1.msra.mxu1 %v1663_v22  ;;  %523 = vmatprep.mubr.f32.mxu1 %v1576_v38 }
 0x2c0   :  { %477 = vmatprep.subr.mxu1 %v1668_v23 }
 0x2c1   :  { %478 = vmatpush1.msra.mxu1 %v1674_v24 }
 0x2c2   :  { %479 = vmatprep.subr.mxu1 %v1681_v25 }
 0x2c3   :  { %480 = vmatpush1.msra.mxu1 %v1688_v26 }
 0x2c4   :  { %481 = vmatprep.subr.mxu1 %v1695_v27 }
 0x2c5   :  { %482 = vmatpush1.msra.mxu1 %v1702_v28 }
 0x2c6   :  { %483 = vmatprep.subr.mxu1 %v1709_v29 }
 0x2c7   :  { %484 = vmatpush1.msra.mxu1 %v1716_v30 }
 0x2c8   :  { %485 = vmatprep.subr.mxu1 %v1723_v31 }
 0x2c9   :  { %486 = vmatpush1.msra.mxu1 %v1730_v33 }
 0x2ca   :  { %487 = vmatprep.subr.mxu1 %v1738_v34 }
 0x2cb   :  { %488 = vmatpush1.msra.mxu1 %v1744_v35 }
 0x2cc   :  { %489 = vmatprep.subr.mxu1 %v1751_v36 }
 0x2cd   :  { %490 = vmatpush1.msra.mxu1 %v1764_v37 }
 0x2ce   :  { %752 = vmatprep.subr.mxu1 %v1658_v21 }
 0x37e   :  { %v237_v43 = vpop.f32.mrf.mxu1 }
 0x37f   :  { %v243_v45 = vrot.slane %v237_v43, 6 }
 0x380   :  { %v239_v46 = vpop.f32.mrf.mxu1 }
 0x381   :  { %v245_v47 = vadd.f32 %v243_v45, %v1642_v10  ;;  %v279_v48 = vadd.f32 %v1796_v44, %v239_v46 }
 0x383   :  { %1454 = vtanh.f32 %v245_v47  ;;  %v1383_v51 = vmul.f32 -1.442695, %v245_v47  ;;  %v1385_v52 = vmul.f32 -1.442695, %v279_v48 }
 0x384   :  { %1456 = vtanh.f32 %v279_v48 }
 0x385   :  { %1458 = vpow2.f32 %v1383_v51 }
 0x386   :  { %1460 = vpow2.f32 %v1385_v52 }
 0x390   :  { %v1455_v49 = vpop.eup %1454 }
 0x391   :  { %v1457_v50 = vpop.eup %1456  ;;  %258 = vrot.lane.b32.xlu1 %v1455_v49, %s1574_s1 }
 0x392   :  { %289 = vrot.lane.b32.xlu0 %v1457_v50, %s1574_s1  ;;  %v1459_v53 = vpop.eup %1458 }
 0x393   :  { %v1461_v54 = vpop.eup %1460  ;;  %v249_v55 = vadd.f32 1.0, %v1459_v53 }
 0x394   :  { %v283_v56 = vadd.f32 1.0, %v1461_v54 }
 0x395   :  { %1462 = vrcp.f32 %v249_v55 }
 0x396   :  { %1464 = vrcp.f32 %v283_v56 }
 0x3a2   :  { %v1463_v57 = vpop.eup %1462 }
 0x3a3   :  { %v1465_v59 = vpop.eup %1464  ;;  %v256_v0 = vmul.f32 %v1463_v57, %v254_v63 }
 0x3a4   :  { %v287_v2 = vmul.f32 0.0, %v1465_v59 }
 0x403   :  { %v259_v58 = vpop.permute.xlu1 %258 }
 0x404   :  { %v261_v60 = vmul.f32 %v1463_v57, %v259_v58  ;;  %v290_v61 = vpop.permute.xlu0 %289 }
 0x405   :  { %v292_v62 = vmul.f32 %v1465_v59, %v290_v61 }
 0x406   :  { %263 = vrot.lane.b32.xlu1 %v261_v60, %s1575_s0 }
 0x407   :  { %294 = vrot.lane.b32.xlu0 %v292_v62, %s1575_s0 }
 0x478   :  { %v264_v1 = vpop.permute.xlu1 %263 }
 0x479   :  { %v1805_v3 = vadd.f32 %v264_v1, %v256_v0  ;;  %v295_v4 = vpop.permute.xlu0 %294 }
 0x47a   :  { %v1807_v5 = vadd.f32 %v295_v4, %v287_v2 }
 0x47b   :  { %1466 = vtanh.f32 %v1805_v3  ;;  %v401_v56 = vrot.slane %v1805_v3, 6 }
 0x47c   :  { %1468 = vtanh.f32 %v1807_v5 }
 0x488   :  { %v1467_v6 = vpop.eup %1466 }
 0x489   :  { %v1469_v7 = vpop.eup %1468  ;;  %269 = vrot.lane.b32.xlu1 %v1467_v6, %s1574_s1 }
 0x48a   :  { %300 = vrot.lane.b32.xlu0 %v1469_v7, %s1574_s1 }
 0x4fb   :  { %v270_v9 = vpop.permute.xlu1 %269 }
 0x4fc   :  { %v272_v11 = vmul.f32 %v1463_v57, %v270_v9  ;;  %v301_v12 = vpop.permute.xlu0 %300 }
 0x4fd   :  { %v1813_v13 = vmul.f32 %v1465_v59, %v301_v12 }
 0x4fe   :  { %305 = vrot.lane.b32.xlu0 %v272_v11, %s1575_s0 }
 0x4ff   :  { %v309_v14 = vrot.slane %v1813_v13, 6 }
 0x501   :  { %310 = vrot.lane.b32.xlu1 %v309_v14, %s1574_s1 }
 0x570   :  { %v306_v15 = vpop.permute.xlu0 %305 }
 0x573   :  { %v311_v16 = vpop.permute.xlu1 %310 }
 0x574   :  { %v313_v17 = vsel %vm39_vm0, %v306_v15, %v311_v16 }
 0x575   :  { %v315_v18 = vrot.slane %v313_v17, 2 }
 0x577   :  { %1386 = vmatmul.mubr.msk.f32.vlgmr.msra.gmra.mxu0 %vm167_vm1, %v315_v18 }
 0x578   :  { %617 = vmatpush1.msra.mxu0 %v1663_v22  ;;  %664 = vmatprep.mubr.f32.mxu0 %v1576_v38 }
 0x579   :  { %618 = vmatprep.subr.mxu0 %v1668_v23 }
 0x57a   :  { %619 = vmatpush1.msra.mxu0 %v1674_v24 }
 0x57b   :  { %620 = vmatprep.subr.mxu0 %v1681_v25 }
 0x57c   :  { %621 = vmatpush1.msra.mxu0 %v1688_v26 }
 0x57d   :  { %622 = vmatprep.subr.mxu0 %v1695_v27 }
 0x57e   :  { %623 = vmatpush1.msra.mxu0 %v1702_v28 }
 0x57f   :  { %624 = vmatprep.subr.mxu0 %v1709_v29 }
 0x580   :  { %625 = vmatpush1.msra.mxu0 %v1716_v30 }
 0x581   :  { %626 = vmatprep.subr.mxu0 %v1723_v31 }
 0x582   :  { %627 = vmatpush1.msra.mxu0 %v1730_v33 }
 0x583   :  { %628 = vmatprep.subr.mxu0 %v1738_v34 }
 0x584   :  { %629 = vmatpush1.msra.mxu0 %v1744_v35 }
 0x585   :  { %630 = vmatprep.subr.mxu0 %v1751_v36 }
 0x586   :  { %631 = vmatpush1.msra.mxu0 %v1764_v37 }
 0x587   :  { %893 = vmatprep.subr.mxu0 %v1658_v21 }
 0x637   :  { %v384_v19 = vpop.f32.mrf.mxu0 }
 0x638   :  { %v390_v20 = vrot.slane %v384_v19, 4 }
 0x639   :  { %v386_v32 = vpop.f32.mrf.mxu0 }
 0x63a   :  { %v392_v39 = vadd.f32 %v390_v20, %v1642_v10  ;;  %v420_v40 = vadd.f32 %v1796_v44, %v386_v32 }
 0x63c   :  { %1470 = vtanh.f32 %v392_v39  ;;  %v1387_v43 = vmul.f32 -1.442695, %v392_v39  ;;  %v1388_v45 = vmul.f32 -1.442695, %v420_v40 }
 0x63d   :  { %1472 = vtanh.f32 %v420_v40 }
 0x63e   :  { %1474 = vpow2.f32 %v1387_v43 }
 0x63f   :  { %1476 = vpow2.f32 %v1388_v45 }
 0x649   :  { %v1471_v41 = vpop.eup %1470 }
 0x64a   :  { %v1473_v42 = vpop.eup %1472  ;;  %405 = vrot.lane.b32.xlu1 %v1471_v41, %s1574_s1 }
 0x64b   :  { %430 = vrot.lane.b32.xlu0 %v1473_v42, %s1574_s1  ;;  %v1475_v46 = vpop.eup %1474 }
 0x64c   :  { %v1477_v47 = vpop.eup %1476  ;;  %v396_v48 = vadd.f32 1.0, %v1475_v46 }
 0x64d   :  { %v424_v49 = vadd.f32 1.0, %v1477_v47 }
 0x64e   :  { %1478 = vrcp.f32 %v396_v48 }
 0x64f   :  { %1480 = vrcp.f32 %v424_v49 }
 0x65b   :  { %v1479_v50 = vpop.eup %1478 }
 0x65c   :  { %v1481_v52 = vpop.eup %1480  ;;  %v403_v57 = vmul.f32 %v1479_v50, %v401_v56 }
 0x65d   :  { %v428_v59 = vmul.f32 %v1481_v52, %v1807_v5 }
 0x6bc   :  { %v406_v51 = vpop.permute.xlu1 %405 }
 0x6bd   :  { %v408_v53 = vmul.f32 %v1479_v50, %v406_v51  ;;  %v431_v54 = vpop.permute.xlu0 %430 }
 0x6be   :  { %v433_v55 = vmul.f32 %v1481_v52, %v431_v54 }
 0x6bf   :  { %410 = vrot.lane.b32.xlu1 %v408_v53, %s1575_s0 }
 0x6c0   :  { %435 = vrot.lane.b32.xlu0 %v433_v55, %s1575_s0 }
 0x731   :  { %v411_v58 = vpop.permute.xlu1 %410 }
 0x732   :  { %v1845_v60 = vadd.f32 %v411_v58, %v403_v57  ;;  %v436_v61 = vpop.permute.xlu0 %435 }
 0x733   :  { %v1847_v62 = vadd.f32 %v436_v61, %v428_v59 }
 0x734   :  { %1482 = vtanh.f32 %v1845_v60  ;;  %v542_v49 = vrot.slane %v1845_v60, 6 }
 0x735   :  { %1484 = vtanh.f32 %v1847_v62 }
 0x741   :  { %v1483_v63 = vpop.eup %1482 }
 0x742   :  { %v1485_v0 = vpop.eup %1484  ;;  %416 = vrot.lane.b32.xlu1 %v1483_v63, %s1574_s1 }
 0x743   :  { %441 = vrot.lane.b32.xlu0 %v1485_v0, %s1574_s1 }
 0x7b4   :  { %v417_v1 = vpop.permute.xlu1 %416 }
 0x7b5   :  { %v419_v2 = vmul.f32 %v1479_v50, %v417_v1  ;;  %v442_v3 = vpop.permute.xlu0 %441 }
 0x7b6   :  { %v1853_v4 = vmul.f32 %v1481_v52, %v442_v3 }
 0x7b7   :  { %446 = vrot.lane.b32.xlu0 %v419_v2, %s1575_s0 }
 0x7b8   :  { %v450_v5 = vrot.slane %v1853_v4, 4  ;;  %v1254_v59 = vrot.slane %v1853_v4, 6 }
 0x7ba   :  { %451 = vrot.lane.b32.xlu1 %v450_v5, %s1574_s1  ;;  %v1268_v1 = vsel %vm1267_vm2, %v1813_v13, %v1254_v59 }
 0x829   :  { %v447_v6 = vpop.permute.xlu0 %446 }
 0x82c   :  { %v452_v7 = vpop.permute.xlu1 %451 }
 0x82d   :  { %v454_v9 = vsel %vm39_vm0, %v447_v6, %v452_v7 }
 0x82e   :  { %v456_v11 = vrot.slane %v454_v9, 4 }
 0x830   :  { %1389 = vmatmul.mubr.msk.f32.vlgmr.msra.gmra.mxu1 %vm167_vm1, %v456_v11 }
 0x831   :  { %753 = vmatpush1.msra.mxu1 %v1663_v22  ;;  %800 = vmatprep.mubr.f32.mxu1 %v1576_v38 }
 0x832   :  { %754 = vmatprep.subr.mxu1 %v1668_v23 }
 0x833   :  { %755 = vmatpush1.msra.mxu1 %v1674_v24 }
 0x834   :  { %756 = vmatprep.subr.mxu1 %v1681_v25 }
 0x835   :  { %757 = vmatpush1.msra.mxu1 %v1688_v26 }
 0x836   :  { %758 = vmatprep.subr.mxu1 %v1695_v27 }
 0x837   :  { %759 = vmatpush1.msra.mxu1 %v1702_v28 }
 0x838   :  { %760 = vmatprep.subr.mxu1 %v1709_v29 }
 0x839   :  { %761 = vmatpush1.msra.mxu1 %v1716_v30 }
 0x83a   :  { %762 = vmatprep.subr.mxu1 %v1723_v31 }
 0x83b   :  { %763 = vmatpush1.msra.mxu1 %v1730_v33 }
 0x83c   :  { %764 = vmatprep.subr.mxu1 %v1738_v34 }
 0x83d   :  { %765 = vmatpush1.msra.mxu1 %v1744_v35 }
 0x83e   :  { %766 = vmatprep.subr.mxu1 %v1751_v36 }
 0x83f   :  { %767 = vmatpush1.msra.mxu1 %v1764_v37 }
 0x840   :  { %1034 = vmatprep.subr.mxu1 %v1658_v21 }
 0x8f0   :  { %v525_v12 = vpop.f32.mrf.mxu1 }
 0x8f1   :  { %v531_v14 = vrot.slane %v525_v12, 2 }
 0x8f2   :  { %v527_v15 = vpop.f32.mrf.mxu1 }
 0x8f3   :  { %v533_v16 = vadd.f32 %v531_v14, %v1642_v10  ;;  %v561_v17 = vadd.f32 %v1796_v44, %v527_v15 }
 0x8f5   :  { %1486 = vtanh.f32 %v533_v16  ;;  %v1390_v20 = vmul.f32 -1.442695, %v533_v16  ;;  %v1391_v32 = vmul.f32 -1.442695, %v561_v17 }
 0x8f6   :  { %1488 = vtanh.f32 %v561_v17 }
 0x8f7   :  { %1490 = vpow2.f32 %v1390_v20 }
 0x8f8   :  { %1492 = vpow2.f32 %v1391_v32 }
 0x902   :  { %v1487_v18 = vpop.eup %1486 }
 0x903   :  { %v1489_v19 = vpop.eup %1488  ;;  %546 = vrot.lane.b32.xlu1 %v1487_v18, %s1574_s1 }
 0x904   :  { %571 = vrot.lane.b32.xlu0 %v1489_v19, %s1574_s1  ;;  %v1491_v39 = vpop.eup %1490 }
 0x905   :  { %v1493_v40 = vpop.eup %1492  ;;  %v537_v41 = vadd.f32 1.0, %v1491_v39 }
 0x906   :  { %v565_v42 = vadd.f32 1.0, %v1493_v40 }
 0x907   :  { %1494 = vrcp.f32 %v537_v41 }
 0x908   :  { %1496 = vrcp.f32 %v565_v42 }
 0x914   :  { %v1495_v10 = vpop.eup %1494 }
 0x915   :  { %v1497_v45 = vpop.eup %1496  ;;  %v544_v50 = vmul.f32 %v1495_v10, %v542_v49 }
 0x916   :  { %v569_v52 = vmul.f32 %v1497_v45, %v1847_v62 }
 0x975   :  { %v547_v43 = vpop.permute.xlu1 %546 }
 0x976   :  { %v549_v46 = vmul.f32 %v1495_v10, %v547_v43  ;;  %v572_v47 = vpop.permute.xlu0 %571 }
 0x977   :  { %v574_v48 = vmul.f32 %v1497_v45, %v572_v47 }
 0x978   :  { %551 = vrot.lane.b32.xlu1 %v549_v46, %s1575_s0 }
 0x979   :  { %576 = vrot.lane.b32.xlu0 %v574_v48, %s1575_s0 }
 0x9ea   :  { %v552_v51 = vpop.permute.xlu1 %551 }
 0x9eb   :  { %v1885_v53 = vadd.f32 %v552_v51, %v544_v50  ;;  %v577_v54 = vpop.permute.xlu0 %576 }
 0x9ec   :  { %v1887_v55 = vadd.f32 %v577_v54, %v569_v52 }
 0x9ed   :  { %1498 = vtanh.f32 %v1885_v53 }
 0x9ee   :  { %1500 = vtanh.f32 %v1887_v55 }
 0x9fa   :  { %v1499_v56 = vpop.eup %1498 }
 0x9fb   :  { %v1501_v57 = vpop.eup %1500  ;;  %557 = vrot.lane.b32.xlu1 %v1499_v56, %s1574_s1 }
 0x9fc   :  { %582 = vrot.lane.b32.xlu0 %v1501_v57, %s1574_s1 }
 0xa6d   :  { %v558_v58 = vpop.permute.xlu1 %557 }
 0xa6e   :  { %v560_v60 = vmul.f32 %v1495_v10, %v558_v58  ;;  %v583_v61 = vpop.permute.xlu0 %582  ;;  %v680_v10 = vrot.slane %v1885_v53, 6 }
 0xa6f   :  { %v585_v62 = vmul.f32 %v1497_v45, %v583_v61 }
 0xa70   :  { %587 = vrot.lane.b32.xlu0 %v560_v60, %s1575_s0 }
 0xa71   :  { %v591_v63 = vrot.slane %v585_v62, 2  ;;  %v1256_v0 = vrot.slane %v585_v62, 4 }
 0xa73   :  { %592 = vrot.lane.b32.xlu1 %v591_v63, %s1574_s1  ;;  %v1899_v2 = vsel %vm1269_vm3, %v1268_v1, %v1256_v0 }
 0xae2   :  { %v588_v3 = vpop.permute.xlu0 %587 }
 0xae5   :  { %v593_v5 = vpop.permute.xlu1 %592 }
 0xae6   :  { %v595_v4 = vsel %vm39_vm0, %v588_v3, %v593_v5 }
 0xae7   :  { %v597_v6 = vrot.slane %v595_v4, 6 }
 0xae9   :  { %1392 = vmatmul.mubr.msk.f32.vlgmr.msra.gmra.mxu0 %vm167_vm1, %v597_v6 }
 0xaea   :  { %894 = vmatpush1.msra.mxu0 %v1663_v22  ;;  %941 = vmatprep.mubr.f32.mxu0 %v1576_v38 }
 0xaeb   :  { %895 = vmatprep.subr.mxu0 %v1668_v23 }
 0xaec   :  { %896 = vmatpush1.msra.mxu0 %v1674_v24 }
 0xaed   :  { %897 = vmatprep.subr.mxu0 %v1681_v25 }
 0xaee   :  { %898 = vmatpush1.msra.mxu0 %v1688_v26 }
 0xaef   :  { %899 = vmatprep.subr.mxu0 %v1695_v27 }
 0xaf0   :  { %900 = vmatpush1.msra.mxu0 %v1702_v28 }
 0xaf1   :  { %901 = vmatprep.subr.mxu0 %v1709_v29 }
 0xaf2   :  { %902 = vmatpush1.msra.mxu0 %v1716_v30 }
 0xaf3   :  { %903 = vmatprep.subr.mxu0 %v1723_v31 }
 0xaf4   :  { %904 = vmatpush1.msra.mxu0 %v1730_v33 }
 0xaf5   :  { %905 = vmatprep.subr.mxu0 %v1738_v34 }
 0xaf6   :  { %906 = vmatpush1.msra.mxu0 %v1744_v35 }
 0xaf7   :  { %907 = vmatprep.subr.mxu0 %v1751_v36 }
 0xaf8   :  { %908 = vmatpush1.msra.mxu0 %v1764_v37 }
 0xaf9   :  { %1175 = vmatprep.subr.mxu0 %v1658_v21 }
 0xba9   :  { %v666_v13 = vpop.f32.mrf.mxu0 }
 0xbaa   :  { %v671_v7 = vadd.f32 %v666_v13, %v1640_v8 }
 0xbab   :  { %v668_v9 = vpop.f32.mrf.mxu0 }
 0xbac   :  { %1502 = vtanh.f32 %v671_v7  ;;  %v699_v11 = vadd.f32 %v1796_v44, %v668_v9  ;;  %v1393_v15 = vmul.f32 -1.442695, %v671_v7 }
 0xbae   :  { %1504 = vtanh.f32 %v699_v11  ;;  %v1394_v16 = vmul.f32 -1.442695, %v699_v11 }
 0xbaf   :  { %1506 = vpow2.f32 %v1393_v15 }
 0xbb0   :  { %1508 = vpow2.f32 %v1394_v16 }
 0xbb9   :  { %v1503_v12 = vpop.eup %1502 }
 0xbba   :  { %684 = vrot.lane.b32.xlu0 %v1503_v12, %s1574_s1 }
 0xbbb   :  { %v1505_v14 = vpop.eup %1504 }
 0xbbc   :  { %709 = vrot.lane.b32.xlu1 %v1505_v14, %s1574_s1  ;;  %v1507_v17 = vpop.eup %1506 }
 0xbbd   :  { %v1509_v21 = vpop.eup %1508  ;;  %v675_v18 = vadd.f32 1.0, %v1507_v17 }
 0xbbe   :  { %v703_v19 = vadd.f32 1.0, %v1509_v21 }
 0xbbf   :  { %1510 = vrcp.f32 %v675_v18 }
 0xbc0   :  { %1512 = vrcp.f32 %v703_v19 }
 0xbcc   :  { %v1511_v20 = vpop.eup %1510 }
 0xbcd   :  { %v1513_v40 = vpop.eup %1512  ;;  %v682_v43 = vmul.f32 %v1511_v20, %v680_v10 }
 0xbce   :  { %v707_v47 = vmul.f32 %v1513_v40, %v1887_v55 }
 0xc2c   :  { %v685_v32 = vpop.permute.xlu0 %684 }
 0xc2d   :  { %v687_v39 = vmul.f32 %v1511_v20, %v685_v32 }
 0xc2e   :  { %v710_v41 = vpop.permute.xlu1 %709 }
 0xc2f   :  { %689 = vrot.lane.b32.xlu0 %v687_v39, %s1575_s0  ;;  %v712_v42 = vmul.f32 %v1513_v40, %v710_v41 }
 0xc31   :  { %714 = vrot.lane.b32.xlu1 %v712_v42, %s1575_s0 }
 0xca1   :  { %v690_v45 = vpop.permute.xlu0 %689 }
 0xca2   :  { %v1927_v46 = vadd.f32 %v690_v45, %v682_v43 }
 0xca3   :  { %v715_v48 = vpop.permute.xlu1 %714 }
 0xca4   :  { %1514 = vtanh.f32 %v1927_v46  ;;  %v1931_v49 = vadd.f32 %v715_v48, %v707_v47  ;;  %v819_v21 = vrot.slane %v1927_v46, 6 }
 0xca6   :  { %1516 = vtanh.f32 %v1931_v49 }
 0xcb1   :  { %v1515_v50 = vpop.eup %1514 }
 0xcb2   :  { %695 = vrot.lane.b32.xlu0 %v1515_v50, %s1574_s1 }
 0xcb3   :  { %v1517_v51 = vpop.eup %1516 }
 0xcb4   :  { %720 = vrot.lane.b32.xlu1 %v1517_v51, %s1574_s1 }
 0xd24   :  { %v696_v52 = vpop.permute.xlu0 %695 }
 0xd25   :  { %v698_v53 = vmul.f32 %v1511_v20, %v696_v52 }
 0xd26   :  { %v721_v54 = vpop.permute.xlu1 %720 }
 0xd27   :  { %725 = vrot.lane.b32.xlu0 %v698_v53, %s1575_s0  ;;  %v723_v56 = vmul.f32 %v1513_v40, %v721_v54 }
 0xd29   :  { %v1258_v55 = vrot.slane %v723_v56, 2  ;;  %729 = vrot.lane.b32.xlu1 %v723_v56, %s1574_s1 }
 0xd2b   :  { %v1940_v57 = vsel %vm1271_vm4, %v1899_v2, %v1258_v55 }
 0xd99   :  { %v726_v58 = vpop.permute.xlu0 %725 }
 0xd9b   :  { %v730_v59 = vpop.permute.xlu1 %729 }
 0xd9c   :  { %v732_v60 = vsel %vm39_vm0, %v726_v58, %v730_v59 }
 0xd9d   :  { %1395 = vmatmul.mubr.msk.f32.vlgmr.msra.gmra.mxu1 %vm167_vm1, %v732_v60 }
 0xd9e   :  { %1035 = vmatpush1.msra.mxu1 %v1663_v22  ;;  %1082 = vmatprep.mubr.f32.mxu1 %v1576_v38 }
 0xd9f   :  { %1036 = vmatprep.subr.mxu1 %v1668_v23 }
 0xda0   :  { %1037 = vmatpush1.msra.mxu1 %v1674_v24 }
 0xda1   :  { %1038 = vmatprep.subr.mxu1 %v1681_v25 }
 0xda2   :  { %1039 = vmatpush1.msra.mxu1 %v1688_v26 }
 0xda3   :  { %1040 = vmatprep.subr.mxu1 %v1695_v27 }
 0xda4   :  { %1041 = vmatpush1.msra.mxu1 %v1702_v28 }
 0xda5   :  { %1042 = vmatprep.subr.mxu1 %v1709_v29 }
 0xda6   :  { %1043 = vmatpush1.msra.mxu1 %v1716_v30 }
 0xda7   :  { %1044 = vmatprep.subr.mxu1 %v1723_v31 }
 0xda8   :  { %1045 = vmatpush1.msra.mxu1 %v1730_v33 }
 0xda9   :  { %1046 = vmatprep.subr.mxu1 %v1738_v34 }
 0xdaa   :  { %1047 = vmatpush1.msra.mxu1 %v1744_v35 }
 0xdab   :  { %1048 = vmatprep.subr.mxu1 %v1751_v36 }
 0xdac   :  { %1049 = vmatpush1.msra.mxu1 %v1764_v37 }
 0xe5d   :  { %v802_v61 = vpop.f32.mrf.mxu1 }
 0xe5e   :  { %v808_v62 = vrot.slane %v802_v61, 6 }
 0xe5f   :  { %v804_v63 = vpop.f32.mrf.mxu1 }
 0xe60   :  { %v810_v0 = vadd.f32 %v808_v62, %v1640_v8  ;;  %v838_v1 = vadd.f32 %v1796_v44, %v804_v63 }
 0xe62   :  { %1518 = vtanh.f32 %v810_v0  ;;  %v1396_v5 = vmul.f32 -1.442695, %v810_v0  ;;  %v1397_v4 = vmul.f32 -1.442695, %v838_v1 }
 0xe63   :  { %1520 = vtanh.f32 %v838_v1 }
 0xe64   :  { %1522 = vpow2.f32 %v1396_v5 }
 0xe65   :  { %1524 = vpow2.f32 %v1397_v4 }
 0xe6f   :  { %v1519_v2 = vpop.eup %1518 }
 0xe70   :  { %v1521_v3 = vpop.eup %1520  ;;  %823 = vrot.lane.b32.xlu1 %v1519_v2, %s1574_s1 }
 0xe71   :  { %848 = vrot.lane.b32.xlu0 %v1521_v3, %s1574_s1  ;;  %v1523_v6 = vpop.eup %1522 }
 0xe72   :  { %v1525_v13 = vpop.eup %1524  ;;  %v814_v7 = vadd.f32 1.0, %v1523_v6 }
 0xe73   :  { %v842_v9 = vadd.f32 1.0, %v1525_v13 }
 0xe74   :  { %1526 = vrcp.f32 %v814_v7 }
 0xe75   :  { %1528 = vrcp.f32 %v842_v9 }
 0xe81   :  { %v1527_v11 = vpop.eup %1526 }
 0xe82   :  { %v1529_v14 = vpop.eup %1528  ;;  %v821_v18 = vmul.f32 %v1527_v11, %v819_v21 }
 0xe83   :  { %v846_v20 = vmul.f32 %v1529_v14, %v1931_v49 }
 0xee2   :  { %v824_v12 = vpop.permute.xlu1 %823 }
 0xee3   :  { %v826_v15 = vmul.f32 %v1527_v11, %v824_v12  ;;  %v849_v16 = vpop.permute.xlu0 %848 }
 0xee4   :  { %v851_v17 = vmul.f32 %v1529_v14, %v849_v16 }
 0xee5   :  { %828 = vrot.lane.b32.xlu1 %v826_v15, %s1575_s0 }
 0xee6   :  { %853 = vrot.lane.b32.xlu0 %v851_v17, %s1575_s0 }
 0xf57   :  { %v829_v19 = vpop.permute.xlu1 %828 }
 0xf58   :  { %v1968_v32 = vadd.f32 %v829_v19, %v821_v18  ;;  %v854_v39 = vpop.permute.xlu0 %853 }
 0xf59   :  { %v1970_v40 = vadd.f32 %v854_v39, %v846_v20 }
 0xf5a   :  { %1530 = vtanh.f32 %v1968_v32  ;;  %v960_v56 = vrot.slane %v1968_v32, 6 }
 0xf5b   :  { %1532 = vtanh.f32 %v1970_v40 }
 0xf67   :  { %v1531_v41 = vpop.eup %1530 }
 0xf68   :  { %v1533_v42 = vpop.eup %1532  ;;  %834 = vrot.lane.b32.xlu1 %v1531_v41, %s1574_s1 }
 0xf69   :  { %859 = vrot.lane.b32.xlu0 %v1533_v42, %s1574_s1 }
 0xfda   :  { %v835_v10 = vpop.permute.xlu1 %834 }
 0xfdb   :  { %v837_v43 = vmul.f32 %v1527_v11, %v835_v10  ;;  %v860_v45 = vpop.permute.xlu0 %859 }
 0xfdc   :  { %v1976_v46 = vmul.f32 %v1529_v14, %v860_v45 }
 0xfdd   :  { %864 = vrot.lane.b32.xlu0 %v837_v43, %s1575_s0 }
 0xfde   :  { %v868_v47 = vrot.slane %v1976_v46, 6 }
 0xfe0   :  { %869 = vrot.lane.b32.xlu1 %v868_v47, %s1574_s1 }
0x104f   :  { %v865_v48 = vpop.permute.xlu0 %864 }
0x1052   :  { %v870_v49 = vpop.permute.xlu1 %869 }
0x1053   :  { %v872_v50 = vsel %vm39_vm0, %v865_v48, %v870_v49 }
0x1054   :  { %v874_v51 = vrot.slane %v872_v50, 2 }
0x1056   :  { %1398 = vmatmul.mubr.msk.f32.vlgmr.msra.gmra.mxu0 %vm167_vm1, %v874_v51 }
0x1057   :  { %1176 = vmatpush1.msra.mxu0 %v1663_v22  ;;  %1223 = vmatprep.mubr.f32.mxu0 %v1576_v38 }
0x1058   :  { %1177 = vmatprep.subr.mxu0 %v1668_v23 }
0x1059   :  { %1178 = vmatpush1.msra.mxu0 %v1674_v24 }
0x105a   :  { %1179 = vmatprep.subr.mxu0 %v1681_v25 }
0x105b   :  { %1180 = vmatpush1.msra.mxu0 %v1688_v26 }
0x105c   :  { %1181 = vmatprep.subr.mxu0 %v1695_v27 }
0x105d   :  { %1182 = vmatpush1.msra.mxu0 %v1702_v28 }
0x105e   :  { %1183 = vmatprep.subr.mxu0 %v1709_v29 }
0x105f   :  { %1184 = vmatpush1.msra.mxu0 %v1716_v30 }
0x1060   :  { %1185 = vmatprep.subr.mxu0 %v1723_v31 }
0x1061   :  { %1186 = vmatpush1.msra.mxu0 %v1730_v33 }
0x1062   :  { %1187 = vmatprep.subr.mxu0 %v1738_v34 }
0x1063   :  { %1188 = vmatpush1.msra.mxu0 %v1744_v35 }
0x1064   :  { %1189 = vmatprep.subr.mxu0 %v1751_v36 }
0x1065   :  { %1190 = vmatpush1.msra.mxu0 %v1764_v37 }
0x1116   :  { %v943_v22 = vpop.f32.mrf.mxu0 }
0x1117   :  { %v949_v23 = vrot.slane %v943_v22, 4 }
0x1118   :  { %v945_v24 = vpop.f32.mrf.mxu0 }
0x1119   :  { %v951_v25 = vadd.f32 %v949_v23, %v1640_v8  ;;  %v979_v26 = vadd.f32 %v1796_v44, %v945_v24 }
0x111b   :  { %1534 = vtanh.f32 %v951_v25  ;;  %v1399_v29 = vmul.f32 -1.442695, %v951_v25  ;;  %v1400_v30 = vmul.f32 -1.442695, %v979_v26 }
0x111c   :  { %1536 = vtanh.f32 %v979_v26 }
0x111d   :  { %1538 = vpow2.f32 %v1399_v29 }
0x111e   :  { %1540 = vpow2.f32 %v1400_v30 }
0x1128   :  { %v1535_v27 = vpop.eup %1534 }
0x1129   :  { %v1537_v28 = vpop.eup %1536  ;;  %964 = vrot.lane.b32.xlu1 %v1535_v27, %s1574_s1 }
0x112a   :  { %989 = vrot.lane.b32.xlu0 %v1537_v28, %s1574_s1  ;;  %v1539_v31 = vpop.eup %1538 }
0x112b   :  { %v1541_v33 = vpop.eup %1540  ;;  %v955_v34 = vadd.f32 1.0, %v1539_v31 }
0x112c   :  { %v983_v35 = vadd.f32 1.0, %v1541_v33 }
0x112d   :  { %1542 = vrcp.f32 %v955_v34 }
0x112e   :  { %1544 = vrcp.f32 %v983_v35 }
0x113a   :  { %v1543_v36 = vpop.eup %1542 }
0x113b   :  { %v1545_v38 = vpop.eup %1544  ;;  %v962_v55 = vmul.f32 %v1543_v36, %v960_v56 }
0x113c   :  { %v987_v59 = vmul.f32 %v1545_v38, %v1970_v40 }
0x119b   :  { %v965_v37 = vpop.permute.xlu1 %964 }
0x119c   :  { %v967_v52 = vmul.f32 %v1543_v36, %v965_v37  ;;  %v990_v53 = vpop.permute.xlu0 %989 }
0x119d   :  { %v992_v54 = vmul.f32 %v1545_v38, %v990_v53 }
0x119e   :  { %969 = vrot.lane.b32.xlu1 %v967_v52, %s1575_s0 }
0x119f   :  { %994 = vrot.lane.b32.xlu0 %v992_v54, %s1575_s0 }
0x1210   :  { %v970_v58 = vpop.permute.xlu1 %969 }
0x1211   :  { %v972_v60 = vadd.f32 %v970_v58, %v962_v55  ;;  %v995_v61 = vpop.permute.xlu0 %994 }
0x1212   :  { %v997_v62 = vadd.f32 %v995_v61, %v987_v59 }
0x1213   :  { %1546 = vtanh.f32 %v972_v60  ;;  %v1101_v47 = vrot.slane %v972_v60, 6 }
0x1214   :  { %1548 = vtanh.f32 %v997_v62 }
0x1220   :  { %v1547_v63 = vpop.eup %1546 }
0x1221   :  { %v1549_v0 = vpop.eup %1548  ;;  %975 = vrot.lane.b32.xlu1 %v1547_v63, %s1574_s1 }
0x1222   :  { %1000 = vrot.lane.b32.xlu0 %v1549_v0, %s1574_s1 }
0x1293   :  { %v976_v1 = vpop.permute.xlu1 %975 }
0x1294   :  { %v978_v2 = vmul.f32 %v1543_v36, %v976_v1  ;;  %v1001_v3 = vpop.permute.xlu0 %1000 }
0x1295   :  { %v1003_v5 = vmul.f32 %v1545_v38, %v1001_v3  ;;  %v1278_v3 = vld [vmem:[%s2064_s5 + $0x10] sm:$0xff] }
0x1296   :  { %1005 = vrot.lane.b32.xlu0 %v978_v2, %s1575_s0  ;;  %v1279_v2 = vld [vmem:[%s2064_s5 + $0x18] sm:$0xff] }
0x1297   :  { %v1009_v4 = vrot.slane %v1003_v5, 4  ;;  %v1260_v27 = vrot.slane %v1003_v5, 6  ;;  %1432 = vmatprep.subr.mxu1 %v1279_v2  ;;  %v1276_v5 = vld [vmem:[%s2064_s5] sm:$0xff] }
0x1299   :  { %1010 = vrot.lane.b32.xlu1 %v1009_v4, %s1574_s1  ;;  %v1273_v34 = vsel %vm1267_vm2, %v1976_v46, %v1260_v27 }
0x1308   :  { %v1006_v6 = vpop.permute.xlu0 %1005 }
0x130b   :  { %v1011_v13 = vpop.permute.xlu1 %1010 }
0x130c   :  { %v1013_v7 = vsel %vm39_vm0, %v1006_v6, %v1011_v13 }
0x130d   :  { %v1015_v9 = vrot.slane %v1013_v7, 4 }
0x130f   :  { %1401 = vmatmul.mubr.msk.f32.vlgmr.msra.gmra.mxu1 %vm167_vm1, %v1015_v9 }
0x1310   :  { %1433 = vmatpush3.msra.mxu1 %v1279_v2 }
0x1311   :  { %1434 = vmatprep.subr.mxu1 %v1278_v3 }
0x1312   :  { %1435 = vmatpush3.msra.mxu1 %v1278_v3 }
0x13cf   :  { %v1084_v11 = vpop.f32.mrf.mxu1 }
0x13d0   :  { %v1090_v12 = vrot.slane %v1084_v11, 2 }
0x13d1   :  { %v1086_v14 = vpop.f32.mrf.mxu1 }
0x13d2   :  { %v1092_v15 = vadd.f32 %v1090_v12, %v1640_v8  ;;  %v1120_v16 = vadd.f32 %v1796_v44, %v1086_v14  ;;  %v1406_v12 = vld [vmem:[%s2065_s6] ss:$0 sm:$0xff] }
0x13d4   :  { %1550 = vtanh.f32 %v1092_v15  ;;  %v1402_v18 = vmul.f32 -1.442695, %v1092_v15  ;;  %v1403_v19 = vmul.f32 -1.442695, %v1120_v16 }
0x13d5   :  { %1552 = vtanh.f32 %v1120_v16 }
0x13d6   :  { %1554 = vpow2.f32 %v1402_v18 }
0x13d7   :  { %1556 = vpow2.f32 %v1403_v19 }
0x13e1   :  { %v1551_v17 = vpop.eup %1550 }
0x13e2   :  { %v1553_v21 = vpop.eup %1552  ;;  %1105 = vrot.lane.b32.xlu1 %v1551_v17, %s1574_s1 }
0x13e3   :  { %1130 = vrot.lane.b32.xlu0 %v1553_v21, %s1574_s1  ;;  %v1555_v20 = vpop.eup %1554 }
0x13e4   :  { %v1557_v32 = vpop.eup %1556  ;;  %v1096_v39 = vadd.f32 1.0, %v1555_v20 }
0x13e5   :  { %v1124_v40 = vadd.f32 1.0, %v1557_v32 }
0x13e6   :  { %1558 = vrcp.f32 %v1096_v39 }
0x13e7   :  { %1560 = vrcp.f32 %v1124_v40 }
0x13f3   :  { %v1559_v8 = vpop.eup %1558 }
0x13f4   :  { %v1561_v42 = vpop.eup %1560  ;;  %v1103_v48 = vmul.f32 %v1559_v8, %v1101_v47 }
0x13f5   :  { %v1128_v50 = vmul.f32 %v1561_v42, %v997_v62 }
0x1454   :  { %v1106_v41 = vpop.permute.xlu1 %1105 }
0x1455   :  { %v1108_v10 = vmul.f32 %v1559_v8, %v1106_v41  ;;  %v1131_v43 = vpop.permute.xlu0 %1130 }
0x1456   :  { %v1133_v45 = vmul.f32 %v1561_v42, %v1131_v43 }
0x1457   :  { %1110 = vrot.lane.b32.xlu1 %v1108_v10, %s1575_s0 }
0x1458   :  { %1135 = vrot.lane.b32.xlu0 %v1133_v45, %s1575_s0 }
0x14c9   :  { %v1111_v49 = vpop.permute.xlu1 %1110 }
0x14ca   :  { %v1113_v51 = vadd.f32 %v1111_v49, %v1103_v48  ;;  %v1136_v22 = vpop.permute.xlu0 %1135 }
0x14cb   :  { %v1138_v23 = vadd.f32 %v1136_v22, %v1128_v50 }
0x14cc   :  { %1562 = vtanh.f32 %v1113_v51 }
0x14cd   :  { %1564 = vtanh.f32 %v1138_v23 }
0x14d9   :  { %v1563_v24 = vpop.eup %1562 }
0x14da   :  { %v1565_v25 = vpop.eup %1564  ;;  %1116 = vrot.lane.b32.xlu1 %v1563_v24, %s1574_s1 }
0x14db   :  { %1141 = vrot.lane.b32.xlu0 %v1565_v25, %s1574_s1 }
0x154c   :  { %v1117_v26 = vpop.permute.xlu1 %1116 }
0x154d   :  { %v1119_v28 = vmul.f32 %v1559_v8, %v1117_v26  ;;  %v1142_v29 = vpop.permute.xlu0 %1141 }
0x154e   :  { %v1144_v30 = vmul.f32 %v1561_v42, %v1142_v29 }
0x154f   :  { %1146 = vrot.lane.b32.xlu0 %v1119_v28, %s1575_s0 }
0x1550   :  { %v1150_v31 = vrot.slane %v1144_v30, 2  ;;  %v1262_v33 = vrot.slane %v1144_v30, 4 }
0x1552   :  { %1151 = vrot.lane.b32.xlu1 %v1150_v31, %s1574_s1  ;;  %v1274_v35 = vsel %vm1269_vm3, %v1273_v34, %v1262_v33 }
0x15c1   :  { %v1147_v36 = vpop.permute.xlu0 %1146 }
0x15c4   :  { %v1152_v37 = vpop.permute.xlu1 %1151 }
0x15c5   :  { %v1154_v38 = vsel %vm39_vm0, %v1147_v36, %v1152_v37 }
0x15c6   :  { %v1156_v52 = vrot.slane %v1154_v38, 6 }
0x15c8   :  { %1404 = vmatmul.mubr.msk.f32.vlgmr.msra.gmra.mxu0 %vm167_vm1, %v1156_v52 }
0x1688   :  { %v1225_v53 = vpop.f32.mrf.mxu0 }
0x168a   :  { %v1226_v54 = vpop.f32.mrf.mxu0 }
0x168b   :  { %v1229_v56 = vadd.f32 %v1796_v44, %v1226_v54 }
0x168d   :  { %1566 = vtanh.f32 %v1229_v56  ;;  %v1405_v46 = vmul.f32 -1.442695, %v1229_v56 }
0x168f   :  { %1568 = vpow2.f32 %v1405_v46 }
0x169a   :  { %v1567_v55 = vpop.eup %1566 }
0x169b   :  { %1239 = vrot.lane.b32.xlu0 %v1567_v55, %s1574_s1 }
0x169c   :  { %v1569_v58 = vpop.eup %1568 }
0x169d   :  { %v1233_v59 = vadd.f32 1.0, %v1569_v58 }
0x169f   :  { %1570 = vrcp.f32 %v1233_v59 }
0x16ac   :  { %v1571_v60 = vpop.eup %1570 }
0x16ad   :  { %v1237_v63 = vmul.f32 %v1571_v60, %v1138_v23 }
0x170d   :  { %v1240_v61 = vpop.permute.xlu0 %1239 }
0x170e   :  { %v1242_v62 = vmul.f32 %v1571_v60, %v1240_v61 }
0x1710   :  { %1244 = vrot.lane.b32.xlu1 %v1242_v62, %s1575_s0 }
0x1714   :  { %1289 = vrot.lane.b32.xlu1 %v1940_v57, %s1575_s0  ;;  %v1277_v57 = vld [vmem:[%s2064_s5 + $0x8] sm:$0xff] }
0x1715   :  { %1436 = vmatprep.subr.mxu1 %v1277_v57 }
0x1716   :  { %1437 = vmatpush3.msra.mxu1 %v1277_v57 }
0x1717   :  { %1438 = vmatprep.subr.mxu1 %v1276_v5 }
0x1718   :  { %1439 = vmatpush3.msra.mxu1 %v1276_v5 }
0x1782   :  { %v1245_v0 = vpop.permute.xlu1 %1244 }
0x1783   :  { %v1247_v44 = vadd.f32 %v1245_v0, %v1237_v63 }
0x1785   :  { %1572 = vtanh.f32 %v1247_v44 }
0x1786   :  { %v1290_v1 = vpop.permute.xlu1 %1289 }
0x1787   :  { %1440 = vmatprep.mubr.msk.f32.mxu1 %vm39_vm0, %v1290_v1 }
0x1792   :  { %v1573_v4 = vpop.eup %1572 }
0x1793   :  { %1250 = vrot.lane.b32.xlu0 %v1573_v4, %s1574_s1 }
0x1805   :  { %v1251_v6 = vpop.permute.xlu0 %1250 }
0x1806   :  { %v1253_v13 = vmul.f32 %v1571_v60, %v1251_v6 }
0x1808   :  { %v1265_v7 = vrot.slane %v1253_v13, 2 }
0x180a   :  { %v1275_v9 = vsel %vm1271_vm4, %v1274_v35, %v1265_v7 }
0x180b   :  { %1291 = vrot.lane.b32.xlu0 %v1275_v9, %s1575_s0 }
0x187d   :  { %v1292_v11 = vpop.permute.xlu0 %1291 }
0x187e   :  { %1441 = vmatmul.mubr.msk.f32.vlgmr.msra.gmra.mxu1 %vm39_vm0, %v1292_v11 }
0x193e   :  { %v1442_v14 = vpop.f32.mrf.mxu1 }
0x193f   :  { %v1369_v15 = vadd.f32 %v1442_v14, %v1406_v12 }
0x1940   :  { %v1363_v16 = vpop.f32.mrf.mxu1 }
0x1941   :  { %1373 = vst [vmem:[%s2066_s7 + $0x8] sm:$0xff] %v1369_v15  ;;  %v1364_v17 = vadd.f32 %v1406_v12, %v1363_v16 }
0x1943   :  { %1372 = vst [vmem:[%s2066_s7] sm:$0xff] %v1364_v17 }

</bundles_post_ra>
